<compile_context>
chip_gen: v7x
topology: tpu7x:2x2x1
jax: 0.10.0
libtpu: 0.0.40
codegen_flags: <defaults>
</compile_context>

<pallas_src>
import math
from functools import partial

import jax
import jax.numpy as jnp
from jax.experimental import pallas as pl
from jax.experimental.pallas import tpu as pltpu


VMEM_LIMIT_BYTES = 32 * 1024 * 1024   # above v5e's 16 MiB default, <= v6e/v7x defaults


# --------------------------------------------------------------------------
# Kernels
# --------------------------------------------------------------------------

def _ln_f32(y, g, b):
    """One-pass LayerNorm in f32 (y is already f32)."""
    mean = jnp.mean(y, axis=-1, keepdims=True)
    var = jnp.mean(y * y, axis=-1, keepdims=True) - mean * mean
    var = jnp.maximum(var, 0.0)                     # guard one-pass cancellation
    return (y - mean) * jax.lax.rsqrt(var + 1e-5) * g + b


def _linear_kernel(x_ref, w_ref, b_ref, o_ref):
    # o = x @ w + b   (bf16 MXU operands, f32 accumulation)
    o_ref[...] = (
        jnp.dot(x_ref[...].astype(jnp.bfloat16), w_ref[...],
                preferred_element_type=jnp.float32)
        + b_ref[...]
    ).astype(o_ref.dtype)


def _layernorm_kernel(x_ref, g_ref, b_ref, o_ref):
    o_ref[...] = _ln_f32(
        x_ref[...].astype(jnp.float32), g_ref[...], b_ref[...]
    ).astype(o_ref.dtype)


def _ffn_ln_kernel(x_ref, w1_ref, b1_ref, w2_ref, b2_ref, g_ref, b_ref, o_ref):
    # fused: up-proj + GELU + down-proj + residual add + LayerNorm
    x_bf = x_ref[...].astype(jnp.bfloat16)
    x_f32 = x_ref[...].astype(jnp.float32)
    h = (jnp.dot(x_bf, w1_ref[...], preferred_element_type=jnp.float32)
         + b1_ref[...])
    # TODO(synk): HF RoBERTa uses the exact erf-based GELU; tanh approximation here.
    c = math.sqrt(2.0 / math.pi)
    h = 0.5 * h * (1.0 + jnp.tanh(c * (h + 0.044715 * h * h * h)))
    y = (jnp.dot(h.astype(jnp.bfloat16), w2_ref[...],
                 preferred_element_type=jnp.float32)
         + b2_ref[...] + x_f32)
    o_ref[...] = _ln_f32(y, g_ref[...], b_ref[...]).astype(o_ref.dtype)


def _attn_layer_kernel(x_ref, m_ref, wqkv_ref, bqkv_ref, wo_ref, bo_ref,
                       g_ref, b_ref, o_ref, acc_ref, *, head_dim):
    # Fused per-layer attention block, grid = (batch, head):
    #   x_ref    : [S, H]   bf16 layer input for one batch element (resident across heads)
    #   m_ref    : [1,1,S]  f32 additive mask (0 / -1e9)
    #   wqkv_ref : [1, H, 3*dh]  bf16 packed [Wq_h | Wk_h | Wv_h] for this head
    #                            (softmax scale pre-folded into the Q columns)
    #   bqkv_ref : [1, 1, 3*dh]  f32 packed bias
    #   wo_ref   : [1, dh, H]    bf16 Wo rows for this head
    #   acc_ref  : [S, H] f32 VMEM accumulator of sum_h (ctx_h @ Wo_h)
    # Only one [S, S] score tile is live at a time (head axis is a grid axis).
    # TODO(synk): for long sequences, additionally tile the q axis and stream
    # K/V with an online softmax (flash-style) to bound the [S,S] tile.
    h_idx = pl.program_id(1)

    @pl.when(h_idx == 0)
    def _():
        acc_ref[...] = jnp.zeros_like(acc_ref)

    x_bf = x_ref[...].astype(jnp.bfloat16)                     # (S, H)
    wqkv = wqkv_ref[0]                                         # (H, 3*dh) bf16
    qkv = (jnp.dot(x_bf, wqkv, preferred_element_type=jnp.float32)
           + bqkv_ref[0])                                      # (S, 3*dh) f32
    qkv_bf = qkv.astype(jnp.bfloat16)
    q = qkv_bf[:, :head_dim]                                   # scale already folded in
    k = qkv_bf[:, head_dim:2 * head_dim]
    v = qkv_bf[:, 2 * head_dim:]

    s = jnp.einsum("qd,kd->qk", q, k,
                   preferred_element_type=jnp.float32)         # (S, S) f32
    s = s + m_ref[0]                                           # f32 mask add
    s = s - jnp.max(s, axis=-1, keepdims=True)
    p = jnp.exp(s)
    p = p * pl.reciprocal(jnp.sum(p, axis=-1, keepdims=True), approx=True)
    ctx = jnp.dot(p.astype(jnp.bfloat16), v,
                  preferred_element_type=jnp.float32)          # (S, dh)

    # accumulate this head's contribution to the output projection (lane-dense)
    acc_ref[...] += jnp.dot(ctx.astype(jnp.bfloat16), wo_ref[0],
                            preferred_element_type=jnp.float32)

    @pl.when(h_idx == pl.num_programs(1) - 1)
    def _():
        y = acc_ref[...] + bo_ref[...] + x_ref[...].astype(jnp.float32)
        o_ref[...] = _ln_f32(y, g_ref[...], b_ref[...]).astype(o_ref.dtype)


# --------------------------------------------------------------------------
# pallas_call wrappers
# --------------------------------------------------------------------------

def _row_tile(m, target=256):
    """Largest row tile <= target that divides m and is a multiple of 8.

    Small inputs run as a single full-array block (no forced >=2 grid steps)."""
    if m <= target:
        return m
    for tm in range(target, 7, -1):
        if m % tm == 0 and tm % 8 == 0:
            return tm
    return m


def _row_spec(tm, ncols):
    return pl.BlockSpec((tm, ncols), lambda i: (i, 0))


def _rep_spec(shape):
    # Replicated constant (block index never changes across the grid).
    # TODO(synk): at real RoBERTa-base size on v5e/v7x add
    # pipeline_mode=pl.Buffered(1) here to single-buffer the weights.
    return pl.BlockSpec(shape, lambda i: (0,) * len(shape))


def _row_tiled_call(kernel, out_cols, row_args, const_args, out_dtype, target=256):
    m = row_args[0].shape[0]
    tm = _row_tile(m, target)
    in_specs = ([_row_spec(tm, a.shape[1]) for a in row_args]
                + [_rep_spec(c.shape) for c in const_args])
    return pl.pallas_call(
        kernel,
        out_shape=jax.ShapeDtypeStruct((m, out_cols), out_dtype),
        grid=(m // tm,),
        in_specs=in_specs,
        out_specs=_row_spec(tm, out_cols),
        compiler_params=pltpu.CompilerParams(
            dimension_semantics=("parallel",),
            vmem_limit_bytes=VMEM_LIMIT_BYTES),
    )(*row_args, *const_args)


def pallas_linear(x, w, b, out_dtype=jnp.float32):
    return _row_tiled_call(_linear_kernel, w.shape[1], [x], [w, b], out_dtype)


def pallas_layernorm(x, g, b, out_dtype=jnp.bfloat16):
    return _row_tiled_call(_layernorm_kernel, x.shape[1], [x], [g, b], out_dtype)


def pallas_ffn_ln(x, lp, out_dtype=jnp.bfloat16):
    return _row_tiled_call(
        _ffn_ln_kernel, lp["w2"].shape[1], [x],
        [lp["w1"], lp["b1"], lp["w2"], lp["b2"], lp["ln2_g"], lp["ln2_b"]],
        out_dtype, target=256)


def pallas_attention_block(x, mask_add, lp, n_heads, head_dim, out_dtype=jnp.bfloat16):
    """Fused QKV proj + multi-head attention + out proj + residual + LayerNorm."""
    B = mask_add.shape[0]
    H = n_heads * head_dim
    M = x.shape[0]
    S = M // B
    kern = partial(_attn_layer_kernel, head_dim=head_dim)
    return pl.pallas_call(
        kern,
        out_shape=jax.ShapeDtypeStruct((M, H), out_dtype),
        grid=(B, n_heads),
        in_specs=[
            pl.BlockSpec((S, H), lambda b, h: (b, 0)),                    # x (resident over h)
            pl.BlockSpec((1, 1, S), lambda b, h: (b, 0, 0)),              # additive mask
            pl.BlockSpec((1, H, 3 * head_dim), lambda b, h: (h, 0, 0)),   # per-head Wqkv
            pl.BlockSpec((1, 1, 3 * head_dim), lambda b, h: (h, 0, 0)),   # per-head bqkv
            pl.BlockSpec((1, head_dim, H), lambda b, h: (h, 0, 0)),       # per-head Wo rows
            pl.BlockSpec((1, H), lambda b, h: (0, 0)),                    # bo
            pl.BlockSpec((1, H), lambda b, h: (0, 0)),                    # ln1_g
            pl.BlockSpec((1, H), lambda b, h: (0, 0)),                    # ln1_b
        ],
        out_specs=pl.BlockSpec((S, H), lambda b, h: (b, 0)),
        scratch_shapes=[pltpu.VMEM((S, H), jnp.float32)],
        compiler_params=pltpu.CompilerParams(
            dimension_semantics=("parallel", "arbitrary"),
            vmem_limit_bytes=VMEM_LIMIT_BYTES),
    )(x, mask_add, lp["w_qkv_h"], lp["b_qkv_h"], lp["wo_h"],
      lp["bo"], lp["ln1_g"], lp["ln1_b"])


# --------------------------------------------------------------------------
# Synthetic small-RoBERTa config & deterministic parameters
# --------------------------------------------------------------------------

CFG = dict(
    vocab=100,
    max_pos=40,        # must cover S + pad_id + 1 (514 for real S=512)
    hidden=128,        # RoBERTa-base uses 768
    heads=4,
    ffn=512,
    layers=2,
    num_labels=9,
    pad_id=1,
    cls_pad=128,       # classifier padded to a lane-dense width
)


def init_params(cfg, seed=0):
    key = jax.random.PRNGKey(seed)
    H, F, nH = cfg["hidden"], cfg["ffn"], cfg["heads"]
    dh = H // nH

    def nrm(k, shape):
        return 0.02 * jax.random.normal(k, shape, dtype=jnp.float32)

    keys = iter(jax.random.split(key, 4 + 6 * cfg["layers"]))

    cls_w = nrm(next(keys), (H, cfg["num_labels"]))
    cls_w_pad = jnp.zeros((H, cfg["cls_pad"]), jnp.float32).at[:, :cfg["num_labels"]].set(cls_w)

    p = {
        "word_emb": nrm(next(keys), (cfg["vocab"], H)),
        "pos_emb": nrm(next(keys), (cfg["max_pos"], H)),
        "type_emb": nrm(next(keys), (1, H)),
        "emb_ln_g": jnp.ones((1, H), jnp.float32),
        "emb_ln_b": jnp.zeros((1, H), jnp.float32),
        "cls_w": cls_w_pad.astype(jnp.bfloat16),            # lane-dense padded classifier
        "cls_b": jnp.zeros((1, cfg["cls_pad"]), jnp.float32),
        "layers": [],
    }

    scale = 1.0 / math.sqrt(dh)
    for _ in range(cfg["layers"]):
        # standard [H, H] projections; softmax scale folded into Wq (and bq) at init
        wq = nrm(next(keys), (H, H)) * scale
        wk = nrm(next(keys), (H, H))
        wv = nrm(next(keys), (H, H))
        wo = nrm(next(keys), (H, H))
        bq = jnp.zeros((H,), jnp.float32)                    # (would also be scaled if nonzero)
        bk = jnp.zeros((H,), jnp.float32)
        bv = jnp.zeros((H,), jnp.float32)

        # per-head packing for BlockSpec streaming inside the attention kernel
        w_qkv_h = jnp.stack(
            [jnp.concatenate([wq[:, h * dh:(h + 1) * dh],
                              wk[:, h * dh:(h + 1) * dh],
                              wv[:, h * dh:(h + 1) * dh]], axis=1)
             for h in range(nH)], axis=0).astype(jnp.bfloat16)        # [nH, H, 3*dh]
        b_qkv_h = jnp.stack(
            [jnp.concatenate([bq[h * dh:(h + 1) * dh],
                              bk[h * dh:(h + 1) * dh],
                              bv[h * dh:(h + 1) * dh]])
             for h in range(nH)], axis=0).reshape(nH, 1, 3 * dh)      # [nH, 1, 3*dh] f32
        wo_h = jnp.stack([wo[h * dh:(h + 1) * dh, :] for h in range(nH)],
                         axis=0).astype(jnp.bfloat16)                 # [nH, dh, H]

        lp = {
            "w_qkv_h": w_qkv_h,
            "b_qkv_h": b_qkv_h,
            "wo_h": wo_h,
            "bo": jnp.zeros((1, H), jnp.float32),
            "ln1_g": jnp.ones((1, H), jnp.float32), "ln1_b": jnp.zeros((1, H), jnp.float32),
            "w1": nrm(next(keys), (H, F)).astype(jnp.bfloat16),
            "b1": jnp.zeros((1, F), jnp.float32),
            "w2": nrm(next(keys), (F, H)).astype(jnp.bfloat16),
            "b2": jnp.zeros((1, H), jnp.float32),
            "ln2_g": jnp.ones((1, H), jnp.float32), "ln2_b": jnp.zeros((1, H), jnp.float32),
        }
        p["layers"].append(lp)
    return p


# --------------------------------------------------------------------------
# Forward pass (== NERModel.forward): RoBERTa encoder -> per-token classifier
# --------------------------------------------------------------------------

def ner_forward(params, input_ids, attention_mask, cfg=CFG):
    B, S = input_ids.shape
    H, nH = cfg["hidden"], cfg["heads"]
    dh = H // nH
    M = B * S

    # --- embeddings (gather glue stays in XLA) ---
    mask_i = attention_mask.astype(jnp.int32)
    # RoBERTa-style position ids: cumsum of mask, offset by padding_idx.
    position_ids = jnp.cumsum(mask_i, axis=1) * mask_i + cfg["pad_id"]
    emb = (jnp.take(params["word_emb"], input_ids, axis=0)
           + jnp.take(params["pos_emb"], position_ids, axis=0)
           + params["type_emb"][0])
    x = pallas_layernorm(emb.reshape(M, H), params["emb_ln_g"], params["emb_ln_b"])  # bf16 [M,H]

    # extended additive attention mask, kept in f32: [B, 1, S]
    mask_add = ((1.0 - attention_mask.astype(jnp.float32)) * -1e9).reshape(B, 1, S)

    # --- transformer layers: 2 fused pallas_calls per layer ---
    for lp in params["layers"]:
        x = pallas_attention_block(x, mask_add, lp, nH, dh)   # QKV+attn+Wo+res+LN, bf16
        x = pallas_ffn_ln(x, lp)                              # FFN+res+LN, bf16

    # --- classifier on last_hidden_state (lane-dense padded, sliced back) ---
    logits = pallas_linear(x, params["cls_w"], params["cls_b"], out_dtype=jnp.float32)
    return logits[:, :cfg["num_labels"]].reshape(B, S, cfg["num_labels"])


# --------------------------------------------------------------------------
# main
# --------------------------------------------------------------------------

if __name__ == "__main__":
    B, S = 2, 8
    key = jax.random.PRNGKey(0)
    k_ids, _ = jax.random.split(key)

    input_ids = jax.random.randint(k_ids, (B, S), 2, CFG["vocab"], dtype=jnp.int32)
    # valid lengths per example -> attention masks, padded positions get pad_id
    lengths = jnp.array([S, S - 3], dtype=jnp.int32)
    attention_masks = (jnp.arange(S)[None, :] < lengths[:, None]).astype(jnp.int32)
    input_ids = jnp.where(attention_masks == 1, input_ids, CFG["pad_id"])

    params = init_params(CFG, seed=0)

    logits = jax.jit(ner_forward)(params, input_ids, attention_masks)
    logits = jax.block_until_ready(logits)

    assert logits.shape == (B, S, CFG["num_labels"])
    assert bool(jnp.all(jnp.isfinite(logits)))
    print("KERNEL_OK")
</pallas_src>

<mosaic_0001>
module attributes {stable_mosaic.version = 11 : i64} {
  func.func @_layernorm_kernel(%arg0: i32, %arg1: memref<16x128xf32, #tpu.memory_space<vmem>>, %arg2: memref<1x128xf32, #tpu.memory_space<vmem>>, %arg3: memref<1x128xf32, #tpu.memory_space<vmem>>, %arg4: memref<16x128xbf16, #tpu.memory_space<vmem>>) attributes {dimension_semantics = [#tpu.dimension_semantics<parallel>], iteration_bounds = array<i64: 1>, scalar_prefetch = 0 : i64, scratch_operands = 0 : i64, tpu.core_type = #tpu.core_type<tc>, window_params = [{transform_indices = @transform_0, window_bounds = array<i64: 16, 128>}, {pipeline_mode = #tpu.pipeline_mode<synchronous>, transform_indices = @transform_1, window_bounds = array<i64: 1, 128>}, {pipeline_mode = #tpu.pipeline_mode<synchronous>, transform_indices = @transform_2, window_bounds = array<i64: 1, 128>}, {transform_indices = @transform_3, window_bounds = array<i64: 16, 128>}]} {
    %c0 = arith.constant 0 : index
    %c0_0 = arith.constant 0 : index
    %0 = vector.load %arg1[%c0, %c0_0] : memref<16x128xf32, #tpu.memory_space<vmem>>, vector<16x128xf32>
    %c0_1 = arith.constant 0 : index
    %c0_2 = arith.constant 0 : index
    %1 = vector.load %arg2[%c0_1, %c0_2] : memref<1x128xf32, #tpu.memory_space<vmem>>, vector<1x128xf32>
    %c0_3 = arith.constant 0 : index
    %c0_4 = arith.constant 0 : index
    %2 = vector.load %arg3[%c0_3, %c0_4] : memref<1x128xf32, #tpu.memory_space<vmem>>, vector<1x128xf32>
    %cst = arith.constant dense<0.000000e+00> : vector<16xf32>
    %3 = vector.multi_reduction <add>, %0, %cst [1] : vector<16x128xf32> to vector<16xf32>
    %4 = vector.shape_cast %3 : vector<16xf32> to vector<16x1xf32>
    %cst_5 = arith.constant 1.280000e+02 : f32
    %5 = vector.broadcast %cst_5 : f32 to vector<16x1xf32>
    %6 = arith.divf %4, %5 : vector<16x1xf32>
    %7 = arith.mulf %0, %0 : vector<16x128xf32>
    %cst_6 = arith.constant dense<0.000000e+00> : vector<16xf32>
    %8 = vector.multi_reduction <add>, %7, %cst_6 [1] : vector<16x128xf32> to vector<16xf32>
    %9 = vector.shape_cast %8 : vector<16xf32> to vector<16x1xf32>
    %cst_7 = arith.constant 1.280000e+02 : f32
    %10 = vector.broadcast %cst_7 : f32 to vector<16x1xf32>
    %11 = arith.divf %9, %10 : vector<16x1xf32>
    %12 = arith.mulf %6, %6 : vector<16x1xf32>
    %13 = arith.subf %11, %12 : vector<16x1xf32>
    %cst_8 = arith.constant 0.000000e+00 : f32
    %14 = vector.broadcast %cst_8 : f32 to vector<16x1xf32>
    %15 = arith.maximumf %13, %14 : vector<16x1xf32>
    %16 = vector.broadcast %6 : vector<16x1xf32> to vector<16x128xf32>
    %17 = arith.subf %0, %16 : vector<16x128xf32>
    %cst_9 = arith.constant 9.99999974E-6 : f32
    %18 = vector.broadcast %cst_9 : f32 to vector<16x1xf32>
    %19 = arith.addf %15, %18 : vector<16x1xf32>
    %20 = math.rsqrt %19 : vector<16x1xf32>
    %21 = vector.broadcast %20 : vector<16x1xf32> to vector<16x128xf32>
    %22 = arith.mulf %17, %21 : vector<16x128xf32>
    %23 = vector.broadcast %1 : vector<1x128xf32> to vector<16x128xf32>
    %24 = arith.mulf %22, %23 : vector<16x128xf32>
    %25 = vector.broadcast %2 : vector<1x128xf32> to vector<16x128xf32>
    %26 = arith.addf %24, %25 : vector<16x128xf32>
    %27 = arith.truncf %26 : vector<16x128xf32> to vector<16x128xbf16>
    %c0_10 = arith.constant 0 : index
    %c0_11 = arith.constant 0 : index
    %28 = vector.load %arg4[%c0_10, %c0_11] : memref<16x128xbf16, #tpu.memory_space<vmem>>, vector<16x128xbf16>
    tpu.vector_store %arg4[%c0_10, %c0_11], %27 {strides = array<i32>} : memref<16x128xbf16, #tpu.memory_space<vmem>>, vector<16x128xbf16>,
    return
  }
  func.func @transform_0(%arg0: i32) -> (i32, i32) {
    %c0_i32 = arith.constant 0 : i32
    %c0_i32_0 = arith.constant 0 : i32
    return %arg0, %c0_i32 : i32, i32
  }
  func.func @transform_1(%arg0: i32) -> (i32, i32) {
    %c0_i32 = arith.constant 0 : i32
    %c0_i32_0 = arith.constant 0 : i32
    %c0_i32_1 = arith.constant 0 : i32
    return %c0_i32, %c0_i32_0 : i32, i32
  }
  func.func @transform_2(%arg0: i32) -> (i32, i32) {
    %c0_i32 = arith.constant 0 : i32
    %c0_i32_0 = arith.constant 0 : i32
    %c0_i32_1 = arith.constant 0 : i32
    return %c0_i32, %c0_i32_0 : i32, i32
  }
  func.func @transform_3(%arg0: i32) -> (i32, i32) {
    %c0_i32 = arith.constant 0 : i32
    %c0_i32_0 = arith.constant 0 : i32
    return %arg0, %c0_i32 : i32, i32
  }
}

module attributes {stable_mosaic.version = 11 : i64} {
  func.func @_attn_layer_kernel(%arg0: i32, %arg1: i32, %arg2: memref<8x128xbf16, #tpu.memory_space<vmem>>, %arg3: memref<1x1x8xf32, #tpu.memory_space<vmem>>, %arg4: memref<1x128x96xbf16, #tpu.memory_space<vmem>>, %arg5: memref<1x1x96xf32, #tpu.memory_space<vmem>>, %arg6: memref<1x32x128xbf16, #tpu.memory_space<vmem>>, %arg7: memref<1x128xf32, #tpu.memory_space<vmem>>, %arg8: memref<1x128xf32, #tpu.memory_space<vmem>>, %arg9: memref<1x128xf32, #tpu.memory_space<vmem>>, %arg10: memref<8x128xbf16, #tpu.memory_space<vmem>>, %arg11: memref<8x128xf32, #tpu.memory_space<vmem>>) attributes {dimension_semantics = [#tpu.dimension_semantics<parallel>, #tpu.dimension_semantics<arbitrary>], iteration_bounds = array<i64: 2, 4>, scalar_prefetch = 0 : i64, scratch_operands = 1 : i64, tpu.core_type = #tpu.core_type<tc>, window_params = [{transform_indices = @transform_0, window_bounds = array<i64: 8, 128>}, {transform_indices = @transform_1, window_bounds = array<i64: 1, 1, 8>}, {transform_indices = @transform_2, window_bounds = array<i64: 1, 128, 96>}, {transform_indices = @transform_3, window_bounds = array<i64: 1, 1, 96>}, {transform_indices = @transform_4, window_bounds = array<i64: 1, 32, 128>}, {pipeline_mode = #tpu.pipeline_mode<synchronous>, transform_indices = @transform_5, window_bounds = array<i64: 1, 128>}, {pipeline_mode = #tpu.pipeline_mode<synchronous>, transform_indices = @transform_6, window_bounds = array<i64: 1, 128>}, {pipeline_mode = #tpu.pipeline_mode<synchronous>, transform_indices = @transform_7, window_bounds = array<i64: 1, 128>}, {transform_indices = @transform_8, window_bounds = array<i64: 8, 128>}]} {
    %c0_i32 = arith.constant 0 : i32
    %0 = arith.cmpi eq, %arg1, %c0_i32 : i32
    %1 = arith.extui %0 : i1 to i32
    %c0_i32_0 = arith.constant 0 : i32
    %2 = arith.cmpi ne, %1, %c0_i32_0 : i32
    scf.if %2 {
      %cst_24 = arith.constant 0.000000e+00 : f32
      %42 = vector.broadcast %cst_24 : f32 to vector<8x128xf32>
      %c0_25 = arith.constant 0 : index
      %c0_26 = arith.constant 0 : index
      %43 = vector.load %arg11[%c0_25, %c0_26] : memref<8x128xf32, #tpu.memory_space<vmem>>, vector<8x128xf32>
      tpu.vector_store %arg11[%c0_25, %c0_26], %42 {strides = array<i32>} : memref<8x128xf32, #tpu.memory_space<vmem>>, vector<8x128xf32>,
    } else {
    }
    %c0 = arith.constant 0 : index
    %c0_1 = arith.constant 0 : index
    %3 = vector.load %arg2[%c0, %c0_1] : memref<8x128xbf16, #tpu.memory_space<vmem>>, vector<8x128xbf16>
    %c0_2 = arith.constant 0 : index
    %c0_3 = arith.constant 0 : index
    %c0_4 = arith.constant 0 : index
    %4 = vector.load %arg4[%c0_2, %c0_3, %c0_4] : memref<1x128x96xbf16, #tpu.memory_space<vmem>>, vector<1x128x96xbf16>
    %5 = vector.shape_cast %4 : vector<1x128x96xbf16> to vector<128x96xbf16>
    %cst = arith.constant dense<0.000000e+00> : vector<8x96xf32>
    %6 = tpu.matmul %3, %5, %cst {dimension_numbers = #tpu.dot_dimension_numbers<[1], [0], [0], [1], [0, 0, 1, 1], [], []>} : vector<8x128xbf16>, vector<128x96xbf16>, vector<8x96xf32> -> vector<8x96xf32>
    %c0_5 = arith.constant 0 : index
    %c0_6 = arith.constant 0 : index
    %c0_7 = arith.constant 0 : index
    %7 = vector.load %arg5[%c0_5, %c0_6, %c0_7] : memref<1x1x96xf32, #tpu.memory_space<vmem>>, vector<1x1x96xf32>
    %8 = vector.shape_cast %7 : vector<1x1x96xf32> to vector<1x96xf32>
    %9 = vector.broadcast %8 : vector<1x96xf32> to vector<8x96xf32>
    %10 = arith.addf %6, %9 : vector<8x96xf32>
    %11 = arith.truncf %10 : vector<8x96xf32> to vector<8x96xbf16>
    %12 = vector.extract_strided_slice %11 {offsets = [0, 0], sizes = [8, 32], strides = [1, 1]} : vector<8x96xbf16> to vector<8x32xbf16>
    %13 = vector.extract_strided_slice %11 {offsets = [0, 32], sizes = [8, 32], strides = [1, 1]} : vector<8x96xbf16> to vector<8x32xbf16>
    %14 = vector.extract_strided_slice %11 {offsets = [0, 64], sizes = [8, 32], strides = [1, 1]} : vector<8x96xbf16> to vector<8x32xbf16>
    "tpu.trace_start"() <{level = 10 : i32, message = "qd,kd->qk"}> : () -> ()
    %cst_8 = arith.constant dense<0.000000e+00> : vector<8x8xf32>
    %15 = tpu.matmul %12, %13, %cst_8 {dimension_numbers = #tpu.dot_dimension_numbers<[1], [1], [0], [0], [0, 0, 1, 0], [], []>} : vector<8x32xbf16>, vector<8x32xbf16>, vector<8x8xf32> -> vector<8x8xf32>
    "tpu.trace_stop"() : () -> ()
    %c0_9 = arith.constant 0 : index
    %c0_10 = arith.constant 0 : index
    %c0_11 = arith.constant 0 : index
    %16 = vector.load %arg3[%c0_9, %c0_10, %c0_11] : memref<1x1x8xf32, #tpu.memory_space<vmem>>, vector<1x1x8xf32>
    %17 = vector.shape_cast %16 : vector<1x1x8xf32> to vector<1x8xf32>
    %18 = vector.broadcast %17 : vector<1x8xf32> to vector<8x8xf32>
    %19 = arith.addf %15, %18 : vector<8x8xf32>
    %cst_12 = arith.constant dense<0xFF800000> : vector<8xf32>
    %20 = vector.multi_reduction <maximumf>, %19, %cst_12 [1] : vector<8x8xf32> to vector<8xf32>
    %21 = vector.shape_cast %20 : vector<8xf32> to vector<8x1xf32>
    %22 = vector.broadcast %21 : vector<8x1xf32> to vector<8x8xf32>
    %23 = arith.subf %19, %22 : vector<8x8xf32>
    %24 = math.exp %23 : vector<8x8xf32>
    %cst_13 = arith.constant dense<0.000000e+00> : vector<8xf32>
    %25 = vector.multi_reduction <add>, %24, %cst_13 [1] : vector<8x8xf32> to vector<8xf32>
    %26 = vector.shape_cast %25 : vector<8xf32> to vector<8x1xf32>
    %27 = tpu.reciprocal %26 {approx = true} : vector<8x1xf32> -> vector<8x1xf32>
    %28 = vector.broadcast %27 : vector<8x1xf32> to vector<8x8xf32>
    %29 = arith.mulf %24, %28 : vector<8x8xf32>
    %30 = arith.truncf %29 : vector<8x8xf32> to vector<8x8xbf16>
    %cst_14 = arith.constant dense<0.000000e+00> : vector<8x32xf32>
    %31 = tpu.matmul %30, %14, %cst_14 {dimension_numbers = #tpu.dot_dimension_numbers<[1], [0], [0], [1], [0, 0, 1, 1], [], []>} : vector<8x8xbf16>, vector<8x32xbf16>, vector<8x32xf32> -> vector<8x32xf32>
    %c0_15 = arith.constant 0 : index
    %c0_16 = arith.constant 0 : index
    %32 = vector.load %arg11[%c0_15, %c0_16] : memref<8x128xf32, #tpu.memory_space<vmem>>, vector<8x128xf32>
    %33 = arith.truncf %31 : vector<8x32xf32> to vector<8x32xbf16>
    %c0_17 = arith.constant 0 : index
    %c0_18 = arith.constant 0 : index
    %c0_19 = arith.constant 0 : index
    %34 = vector.load %arg6[%c0_17, %c0_18, %c0_19] : memref<1x32x128xbf16, #tpu.memory_space<vmem>>, vector<1x32x128xbf16>
    %35 = vector.shape_cast %34 : vector<1x32x128xbf16> to vector<32x128xbf16>
    %cst_20 = arith.constant dense<0.000000e+00> : vector<8x128xf32>
    %36 = tpu.matmul %33, %35, %cst_20 {dimension_numbers = #tpu.dot_dimension_numbers<[1], [0], [0], [1], [0, 0, 1, 1], [], []>} : vector<8x32xbf16>, vector<32x128xbf16>, vector<8x128xf32> -> vector<8x128xf32>
    %37 = arith.addf %32, %36 : vector<8x128xf32>
    %c0_21 = arith.constant 0 : index
    %c0_22 = arith.constant 0 : index
    %38 = vector.load %arg11[%c0_21, %c0_22] : memref<8x128xf32, #tpu.memory_space<vmem>>, vector<8x128xf32>
    tpu.vector_store %arg11[%c0_21, %c0_22], %37 {strides = array<i32>} : memref<8x128xf32, #tpu.memory_space<vmem>>, vector<8x128xf32>,
    %c3_i32 = arith.constant 3 : i32
    %39 = arith.cmpi eq, %arg1, %c3_i32 : i32
    %40 = arith.extui %39 : i1 to i32
    %c0_i32_23 = arith.constant 0 : i32
    %41 = arith.cmpi ne, %40, %c0_i32_23 : i32
    scf.if %41 {
      %c0_24 = arith.constant 0 : index
      %c0_25 = arith.constant 0 : index
      %42 = vector.load %arg11[%c0_24, %c0_25] : memref<8x128xf32, #tpu.memory_space<vmem>>, vector<8x128xf32>
      %c0_26 = arith.constant 0 : index
      %c0_27 = arith.constant 0 : index
      %43 = vector.load %arg7[%c0_26, %c0_27] : memref<1x128xf32, #tpu.memory_space<vmem>>, vector<1x128xf32>
      %44 = vector.broadcast %43 : vector<1x128xf32> to vector<8x128xf32>
      %45 = arith.addf %42, %44 : vector<8x128xf32>
      %c0_28 = arith.constant 0 : index
      %c0_29 = arith.constant 0 : index
      %46 = vector.load %arg2[%c0_28, %c0_29] : memref<8x128xbf16, #tpu.memory_space<vmem>>, vector<8x128xbf16>
      %47 = arith.extf %46 : vector<8x128xbf16> to vector<8x128xf32>
      %48 = arith.addf %45, %47 : vector<8x128xf32>
      %c0_30 = arith.constant 0 : index
      %c0_31 = arith.constant 0 : index
      %49 = vector.load %arg8[%c0_30, %c0_31] : memref<1x128xf32, #tpu.memory_space<vmem>>, vector<1x128xf32>
      %c0_32 = arith.constant 0 : index
      %c0_33 = arith.constant 0 : index
      %50 = vector.load %arg9[%c0_32, %c0_33] : memref<1x128xf32, #tpu.memory_space<vmem>>, vector<1x128xf32>
      %cst_34 = arith.constant dense<0.000000e+00> : vector<8xf32>
      %51 = vector.multi_reduction <add>, %48, %cst_34 [1] : vector<8x128xf32> to vector<8xf32>
      %52 = vector.shape_cast %51 : vector<8xf32> to vector<8x1xf32>
      %cst_35 = arith.constant 1.280000e+02 : f32
      %53 = vector.broadcast %cst_35 : f32 to vector<8x1xf32>
      %54 = arith.divf %52, %53 : vector<8x1xf32>
      %55 = arith.mulf %48, %48 : vector<8x128xf32>
      %cst_36 = arith.constant dense<0.000000e+00> : vector<8xf32>
      %56 = vector.multi_reduction <add>, %55, %cst_36 [1] : vector<8x128xf32> to vector<8xf32>
      %57 = vector.shape_cast %56 : vector<8xf32> to vector<8x1xf32>
      %cst_37 = arith.constant 1.280000e+02 : f32
      %58 = vector.broadcast %cst_37 : f32 to vector<8x1xf32>
      %59 = arith.divf %57, %58 : vector<8x1xf32>
      %60 = arith.mulf %54, %54 : vector<8x1xf32>
      %61 = arith.subf %59, %60 : vector<8x1xf32>
      %cst_38 = arith.constant 0.000000e+00 : f32
      %62 = vector.broadcast %cst_38 : f32 to vector<8x1xf32>
      %63 = arith.maximumf %61, %62 : vector<8x1xf32>
      %64 = vector.broadcast %54 : vector<8x1xf32> to vector<8x128xf32>
      %65 = arith.subf %48, %64 : vector<8x128xf32>
      %cst_39 = arith.constant 9.99999974E-6 : f32
      %66 = vector.broadcast %cst_39 : f32 to vector<8x1xf32>
      %67 = arith.addf %63, %66 : vector<8x1xf32>
      %68 = math.rsqrt %67 : vector<8x1xf32>
      %69 = vector.broadcast %68 : vector<8x1xf32> to vector<8x128xf32>
      %70 = arith.mulf %65, %69 : vector<8x128xf32>
      %71 = vector.broadcast %49 : vector<1x128xf32> to vector<8x128xf32>
      %72 = arith.mulf %70, %71 : vector<8x128xf32>
      %73 = vector.broadcast %50 : vector<1x128xf32> to vector<8x128xf32>
      %74 = arith.addf %72, %73 : vector<8x128xf32>
      %75 = arith.truncf %74 : vector<8x128xf32> to vector<8x128xbf16>
      %c0_40 = arith.constant 0 : index
      %c0_41 = arith.constant 0 : index
      %76 = vector.load %arg10[%c0_40, %c0_41] : memref<8x128xbf16, #tpu.memory_space<vmem>>, vector<8x128xbf16>
      tpu.vector_store %arg10[%c0_40, %c0_41], %75 {strides = array<i32>} : memref<8x128xbf16, #tpu.memory_space<vmem>>, vector<8x128xbf16>,
    } else {
    }
    return
  }
  func.func @transform_0(%arg0: i32, %arg1: i32) -> (i32, i32) {
    %c0_i32 = arith.constant 0 : i32
    %c0_i32_0 = arith.constant 0 : i32
    return %arg0, %c0_i32 : i32, i32
  }
  func.func @transform_1(%arg0: i32, %arg1: i32) -> (i32, i32, i32) {
    %c0_i32 = arith.constant 0 : i32
    %c0_i32_0 = arith.constant 0 : i32
    %c0_i32_1 = arith.constant 0 : i32
    return %arg0, %c0_i32, %c0_i32_0 : i32, i32, i32
  }
  func.func @transform_2(%arg0: i32, %arg1: i32) -> (i32, i32, i32) {
    %c0_i32 = arith.constant 0 : i32
    %c0_i32_0 = arith.constant 0 : i32
    %c0_i32_1 = arith.constant 0 : i32
    return %arg1, %c0_i32, %c0_i32_0 : i32, i32, i32
  }
  func.func @transform_3(%arg0: i32, %arg1: i32) -> (i32, i32, i32) {
    %c0_i32 = arith.constant 0 : i32
    %c0_i32_0 = arith.constant 0 : i32
    %c0_i32_1 = arith.constant 0 : i32
    return %arg1, %c0_i32, %c0_i32_0 : i32, i32, i32
  }
  func.func @transform_4(%arg0: i32, %arg1: i32) -> (i32, i32, i32) {
    %c0_i32 = arith.constant 0 : i32
    %c0_i32_0 = arith.constant 0 : i32
    %c0_i32_1 = arith.constant 0 : i32
    return %arg1, %c0_i32, %c0_i32_0 : i32, i32, i32
  }
  func.func @transform_5(%arg0: i32, %arg1: i32) -> (i32, i32) {
    %c0_i32 = arith.constant 0 : i32
    %c0_i32_0 = arith.constant 0 : i32
    %c0_i32_1 = arith.constant 0 : i32
    return %c0_i32, %c0_i32_0 : i32, i32
  }
  func.func @transform_6(%arg0: i32, %arg1: i32) -> (i32, i32) {
    %c0_i32 = arith.constant 0 : i32
    %c0_i32_0 = arith.constant 0 : i32
    %c0_i32_1 = arith.constant 0 : i32
    return %c0_i32, %c0_i32_0 : i32, i32
  }
  func.func @transform_7(%arg0: i32, %arg1: i32) -> (i32, i32) {
    %c0_i32 = arith.constant 0 : i32
    %c0_i32_0 = arith.constant 0 : i32
    %c0_i32_1 = arith.constant 0 : i32
    return %c0_i32, %c0_i32_0 : i32, i32
  }
  func.func @transform_8(%arg0: i32, %arg1: i32) -> (i32, i32) {
    %c0_i32 = arith.constant 0 : i32
    %c0_i32_0 = arith.constant 0 : i32
    return %arg0, %c0_i32 : i32, i32
  }
}

module attributes {stable_mosaic.version = 11 : i64} {
  func.func @_ffn_ln_kernel(%arg0: i32, %arg1: memref<16x128xbf16, #tpu.memory_space<vmem>>, %arg2: memref<128x512xbf16, #tpu.memory_space<vmem>>, %arg3: memref<1x512xf32, #tpu.memory_space<vmem>>, %arg4: memref<512x128xbf16, #tpu.memory_space<vmem>>, %arg5: memref<1x128xf32, #tpu.memory_space<vmem>>, %arg6: memref<1x128xf32, #tpu.memory_space<vmem>>, %arg7: memref<1x128xf32, #tpu.memory_space<vmem>>, %arg8: memref<16x128xbf16, #tpu.memory_space<vmem>>) attributes {dimension_semantics = [#tpu.dimension_semantics<parallel>], iteration_bounds = array<i64: 1>, scalar_prefetch = 0 : i64, scratch_operands = 0 : i64, tpu.core_type = #tpu.core_type<tc>, window_params = [{transform_indices = @transform_0, window_bounds = array<i64: 16, 128>}, {pipeline_mode = #tpu.pipeline_mode<synchronous>, transform_indices = @transform_1, window_bounds = array<i64: 128, 512>}, {pipeline_mode = #tpu.pipeline_mode<synchronous>, transform_indices = @transform_2, window_bounds = array<i64: 1, 512>}, {pipeline_mode = #tpu.pipeline_mode<synchronous>, transform_indices = @transform_3, window_bounds = array<i64: 512, 128>}, {pipeline_mode = #tpu.pipeline_mode<synchronous>, transform_indices = @transform_4, window_bounds = array<i64: 1, 128>}, {pipeline_mode = #tpu.pipeline_mode<synchronous>, transform_indices = @transform_5, window_bounds = array<i64: 1, 128>}, {pipeline_mode = #tpu.pipeline_mode<synchronous>, transform_indices = @transform_6, window_bounds = array<i64: 1, 128>}, {transform_indices = @transform_7, window_bounds = array<i64: 16, 128>}]} {
    %c0 = arith.constant 0 : index
    %c0_0 = arith.constant 0 : index
    %0 = vector.load %arg1[%c0, %c0_0] : memref<16x128xbf16, #tpu.memory_space<vmem>>, vector<16x128xbf16>
    %c0_1 = arith.constant 0 : index
    %c0_2 = arith.constant 0 : index
    %1 = vector.load %arg1[%c0_1, %c0_2] : memref<16x128xbf16, #tpu.memory_space<vmem>>, vector<16x128xbf16>
    %2 = arith.extf %1 : vector<16x128xbf16> to vector<16x128xf32>
    %c0_3 = arith.constant 0 : index
    %c0_4 = arith.constant 0 : index
    %3 = vector.load %arg2[%c0_3, %c0_4] : memref<128x512xbf16, #tpu.memory_space<vmem>>, vector<128x512xbf16>
    %cst = arith.constant dense<0.000000e+00> : vector<16x512xf32>
    %4 = tpu.matmul %0, %3, %cst {dimension_numbers = #tpu.dot_dimension_numbers<[1], [0], [0], [1], [0, 0, 1, 1], [], []>} : vector<16x128xbf16>, vector<128x512xbf16>, vector<16x512xf32> -> vector<16x512xf32>
    %c0_5 = arith.constant 0 : index
    %c0_6 = arith.constant 0 : index
    %5 = vector.load %arg3[%c0_5, %c0_6] : memref<1x512xf32, #tpu.memory_space<vmem>>, vector<1x512xf32>
    %6 = vector.broadcast %5 : vector<1x512xf32> to vector<16x512xf32>
    %7 = arith.addf %4, %6 : vector<16x512xf32>
    %cst_7 = arith.constant 5.000000e-01 : f32
    %8 = vector.broadcast %cst_7 : f32 to vector<16x512xf32>
    %9 = arith.mulf %8, %7 : vector<16x512xf32>
    %cst_8 = arith.constant 4.471500e-02 : f32
    %10 = vector.broadcast %cst_8 : f32 to vector<16x512xf32>
    %11 = arith.mulf %10, %7 : vector<16x512xf32>
    %12 = arith.mulf %11, %7 : vector<16x512xf32>
    %13 = arith.mulf %12, %7 : vector<16x512xf32>
    %14 = arith.addf %7, %13 : vector<16x512xf32>
    %cst_9 = arith.constant 0.797884583 : f32
    %15 = vector.broadcast %cst_9 : f32 to vector<16x512xf32>
    %16 = arith.mulf %15, %14 : vector<16x512xf32>
    %17 = math.tanh %16 : vector<16x512xf32>
    %cst_10 = arith.constant 1.000000e+00 : f32
    %18 = vector.broadcast %cst_10 : f32 to vector<16x512xf32>
    %19 = arith.addf %18, %17 : vector<16x512xf32>
    %20 = arith.mulf %9, %19 : vector<16x512xf32>
    %21 = arith.truncf %20 : vector<16x512xf32> to vector<16x512xbf16>
    %c0_11 = arith.constant 0 : index
    %c0_12 = arith.constant 0 : index
    %22 = vector.load %arg4[%c0_11, %c0_12] : memref<512x128xbf16, #tpu.memory_space<vmem>>, vector<512x128xbf16>
    %cst_13 = arith.constant dense<0.000000e+00> : vector<16x128xf32>
    %23 = tpu.matmul %21, %22, %cst_13 {dimension_numbers = #tpu.dot_dimension_numbers<[1], [0], [0], [1], [0, 0, 1, 1], [], []>} : vector<16x512xbf16>, vector<512x128xbf16>, vector<16x128xf32> -> vector<16x128xf32>
    %c0_14 = arith.constant 0 : index
    %c0_15 = arith.constant 0 : index
    %24 = vector.load %arg5[%c0_14, %c0_15] : memref<1x128xf32, #tpu.memory_space<vmem>>, vector<1x128xf32>
    %25 = vector.broadcast %24 : vector<1x128xf32> to vector<16x128xf32>
    %26 = arith.addf %23, %25 : vector<16x128xf32>
    %27 = arith.addf %26, %2 : vector<16x128xf32>
    %c0_16 = arith.constant 0 : index
    %c0_17 = arith.constant 0 : index
    %28 = vector.load %arg6[%c0_16, %c0_17] : memref<1x128xf32, #tpu.memory_space<vmem>>, vector<1x128xf32>
    %c0_18 = arith.constant 0 : index
    %c0_19 = arith.constant 0 : index
    %29 = vector.load %arg7[%c0_18, %c0_19] : memref<1x128xf32, #tpu.memory_space<vmem>>, vector<1x128xf32>
    %cst_20 = arith.constant dense<0.000000e+00> : vector<16xf32>
    %30 = vector.multi_reduction <add>, %27, %cst_20 [1] : vector<16x128xf32> to vector<16xf32>
    %31 = vector.shape_cast %30 : vector<16xf32> to vector<16x1xf32>
    %cst_21 = arith.constant 1.280000e+02 : f32
    %32 = vector.broadcast %cst_21 : f32 to vector<16x1xf32>
    %33 = arith.divf %31, %32 : vector<16x1xf32>
    %34 = arith.mulf %27, %27 : vector<16x128xf32>
    %cst_22 = arith.constant dense<0.000000e+00> : vector<16xf32>
    %35 = vector.multi_reduction <add>, %34, %cst_22 [1] : vector<16x128xf32> to vector<16xf32>
    %36 = vector.shape_cast %35 : vector<16xf32> to vector<16x1xf32>
    %cst_23 = arith.constant 1.280000e+02 : f32
    %37 = vector.broadcast %cst_23 : f32 to vector<16x1xf32>
    %38 = arith.divf %36, %37 : vector<16x1xf32>
    %39 = arith.mulf %33, %33 : vector<16x1xf32>
    %40 = arith.subf %38, %39 : vector<16x1xf32>
    %cst_24 = arith.constant 0.000000e+00 : f32
    %41 = vector.broadcast %cst_24 : f32 to vector<16x1xf32>
    %42 = arith.maximumf %40, %41 : vector<16x1xf32>
    %43 = vector.broadcast %33 : vector<16x1xf32> to vector<16x128xf32>
    %44 = arith.subf %27, %43 : vector<16x128xf32>
    %cst_25 = arith.constant 9.99999974E-6 : f32
    %45 = vector.broadcast %cst_25 : f32 to vector<16x1xf32>
    %46 = arith.addf %42, %45 : vector<16x1xf32>
    %47 = math.rsqrt %46 : vector<16x1xf32>
    %48 = vector.broadcast %47 : vector<16x1xf32> to vector<16x128xf32>
    %49 = arith.mulf %44, %48 : vector<16x128xf32>
    %50 = vector.broadcast %28 : vector<1x128xf32> to vector<16x128xf32>
    %51 = arith.mulf %49, %50 : vector<16x128xf32>
    %52 = vector.broadcast %29 : vector<1x128xf32> to vector<16x128xf32>
    %53 = arith.addf %51, %52 : vector<16x128xf32>
    %54 = arith.truncf %53 : vector<16x128xf32> to vector<16x128xbf16>
    %c0_26 = arith.constant 0 : index
    %c0_27 = arith.constant 0 : index
    %55 = vector.load %arg8[%c0_26, %c0_27] : memref<16x128xbf16, #tpu.memory_space<vmem>>, vector<16x128xbf16>
    tpu.vector_store %arg8[%c0_26, %c0_27], %54 {strides = array<i32>} : memref<16x128xbf16, #tpu.memory_space<vmem>>, vector<16x128xbf16>,
    return
  }
  func.func @transform_0(%arg0: i32) -> (i32, i32) {
    %c0_i32 = arith.constant 0 : i32
    %c0_i32_0 = arith.constant 0 : i32
    return %arg0, %c0_i32 : i32, i32
  }
  func.func @transform_1(%arg0: i32) -> (i32, i32) {
    %c0_i32 = arith.constant 0 : i32
    %c0_i32_0 = arith.constant 0 : i32
    %c0_i32_1 = arith.constant 0 : i32
    return %c0_i32, %c0_i32_0 : i32, i32
  }
  func.func @transform_2(%arg0: i32) -> (i32, i32) {
    %c0_i32 = arith.constant 0 : i32
    %c0_i32_0 = arith.constant 0 : i32
    %c0_i32_1 = arith.constant 0 : i32
    return %c0_i32, %c0_i32_0 : i32, i32
  }
  func.func @transform_3(%arg0: i32) -> (i32, i32) {
    %c0_i32 = arith.constant 0 : i32
    %c0_i32_0 = arith.constant 0 : i32
    %c0_i32_1 = arith.constant 0 : i32
    return %c0_i32, %c0_i32_0 : i32, i32
  }
  func.func @transform_4(%arg0: i32) -> (i32, i32) {
    %c0_i32 = arith.constant 0 : i32
    %c0_i32_0 = arith.constant 0 : i32
    %c0_i32_1 = arith.constant 0 : i32
    return %c0_i32, %c0_i32_0 : i32, i32
  }
  func.func @transform_5(%arg0: i32) -> (i32, i32) {
    %c0_i32 = arith.constant 0 : i32
    %c0_i32_0 = arith.constant 0 : i32
    %c0_i32_1 = arith.constant 0 : i32
    return %c0_i32, %c0_i32_0 : i32, i32
  }
  func.func @transform_6(%arg0: i32) -> (i32, i32) {
    %c0_i32 = arith.constant 0 : i32
    %c0_i32_0 = arith.constant 0 : i32
    %c0_i32_1 = arith.constant 0 : i32
    return %c0_i32, %c0_i32_0 : i32, i32
  }
  func.func @transform_7(%arg0: i32) -> (i32, i32) {
    %c0_i32 = arith.constant 0 : i32
    %c0_i32_0 = arith.constant 0 : i32
    return %arg0, %c0_i32 : i32, i32
  }
}

module attributes {stable_mosaic.version = 11 : i64} {
  func.func @_linear_kernel(%arg0: i32, %arg1: memref<16x128xbf16, #tpu.memory_space<vmem>>, %arg2: memref<128x128xbf16, #tpu.memory_space<vmem>>, %arg3: memref<1x128xf32, #tpu.memory_space<vmem>>, %arg4: memref<16x128xf32, #tpu.memory_space<vmem>>) attributes {dimension_semantics = [#tpu.dimension_semantics<parallel>], iteration_bounds = array<i64: 1>, scalar_prefetch = 0 : i64, scratch_operands = 0 : i64, tpu.core_type = #tpu.core_type<tc>, window_params = [{transform_indices = @transform_0, window_bounds = array<i64: 16, 128>}, {pipeline_mode = #tpu.pipeline_mode<synchronous>, transform_indices = @transform_1, window_bounds = array<i64: 128, 128>}, {pipeline_mode = #tpu.pipeline_mode<synchronous>, transform_indices = @transform_2, window_bounds = array<i64: 1, 128>}, {transform_indices = @transform_3, window_bounds = array<i64: 16, 128>}]} {
    %c0 = arith.constant 0 : index
    %c0_0 = arith.constant 0 : index
    %0 = vector.load %arg1[%c0, %c0_0] : memref<16x128xbf16, #tpu.memory_space<vmem>>, vector<16x128xbf16>
    %c0_1 = arith.constant 0 : index
    %c0_2 = arith.constant 0 : index
    %1 = vector.load %arg2[%c0_1, %c0_2] : memref<128x128xbf16, #tpu.memory_space<vmem>>, vector<128x128xbf16>
    %cst = arith.constant dense<0.000000e+00> : vector<16x128xf32>
    %2 = tpu.matmul %0, %1, %cst {dimension_numbers = #tpu.dot_dimension_numbers<[1], [0], [0], [1], [0, 0, 1, 1], [], []>} : vector<16x128xbf16>, vector<128x128xbf16>, vector<16x128xf32> -> vector<16x128xf32>
    %c0_3 = arith.constant 0 : index
    %c0_4 = arith.constant 0 : index
    %3 = vector.load %arg3[%c0_3, %c0_4] : memref<1x128xf32, #tpu.memory_space<vmem>>, vector<1x128xf32>
    %4 = vector.broadcast %3 : vector<1x128xf32> to vector<16x128xf32>
    %5 = arith.addf %2, %4 : vector<16x128xf32>
    %c0_5 = arith.constant 0 : index
    %c0_6 = arith.constant 0 : index
    %6 = vector.load %arg4[%c0_5, %c0_6] : memref<16x128xf32, #tpu.memory_space<vmem>>, vector<16x128xf32>
    tpu.vector_store %arg4[%c0_5, %c0_6], %5 {strides = array<i32>} : memref<16x128xf32, #tpu.memory_space<vmem>>, vector<16x128xf32>,
    return
  }
  func.func @transform_0(%arg0: i32) -> (i32, i32) {
    %c0_i32 = arith.constant 0 : i32
    %c0_i32_0 = arith.constant 0 : i32
    return %arg0, %c0_i32 : i32, i32
  }
  func.func @transform_1(%arg0: i32) -> (i32, i32) {
    %c0_i32 = arith.constant 0 : i32
    %c0_i32_0 = arith.constant 0 : i32
    %c0_i32_1 = arith.constant 0 : i32
    return %c0_i32, %c0_i32_0 : i32, i32
  }
  func.func @transform_2(%arg0: i32) -> (i32, i32) {
    %c0_i32 = arith.constant 0 : i32
    %c0_i32_0 = arith.constant 0 : i32
    %c0_i32_1 = arith.constant 0 : i32
    return %c0_i32, %c0_i32_0 : i32, i32
  }
  func.func @transform_3(%arg0: i32) -> (i32, i32) {
    %c0_i32 = arith.constant 0 : i32
    %c0_i32_0 = arith.constant 0 : i32
    return %arg0, %c0_i32 : i32, i32
  }
}

</mosaic_0001>

<bundles_post_ra>
// kernel: ner_forward.6
= control target key start
LH: loop header
LB: loop body
LE: loop exit
PB: predicated region body
PF: predicated region fallthrough
CT: control target
= control target key end

     0   :  { %s127_s0 = inlined_call_operand.vmem [shape: f32[16,128], index: 0, kind: input, shape index: {}]   ;;  %s128_s1 = inlined_call_operand.vmem [shape: f32[1,128], index: 1, kind: input, shape index: {}]   ;;  %s129_s2 = inlined_call_operand.vmem [shape: f32[1,128], index: 2, kind: input, shape index: {}]   ;;  %s130_s3 = inlined_call_operand.vmem [shape: bf16[16,128], index: 3, kind: output, shape index: {}]  }
   0x1   :  { %v14_v0 = vld [vmem:[%s127_s0] sm:$0xff]  ;;  %v15_v1 = vld [vmem:[%s127_s0 + $0x8] sm:$0xff] }
   0x2   :  { %18 = vadd.xlane.f32.xlu0 %v14_v0  ;;  %v25_v2 = vmul.f32 %v14_v0, %v14_v0  ;;  %v26_v3 = vmul.f32 %v15_v1, %v15_v1  ;;  %v77_v23 = vld [vmem:[%s128_s1] ss:$0 sm:$0xff] }
   0x3   :  { %v78_v28 = vld [vmem:[%s129_s2] ss:$0 sm:$0xff] }
   0x4   :  { %27 = vadd.xlane.f32.xlu1 %v25_v2 }
   0x6   :  { %20 = vadd.xlane.f32.xlu0 %v15_v1 }
   0x8   :  { %29 = vadd.xlane.f32.xlu1 %v26_v3 }
  0x8f   :  { %v19_v4 = vpop.xlane.xlu0 %18 }
  0x90   :  { %v23_v5 = vmul.f32 0.0078125, %v19_v4 }
  0x91   :  { %v28_v6 = vpop.xlane.xlu1 %27 }
  0x92   :  { %v33_v7 = vmul.f32 %v23_v5, %v23_v5  ;;  %v31_v8 = vmul.f32 0.0078125, %v28_v6  ;;  %v39_v20 = vsub.f32 %v14_v0, %v23_v5 }
  0x93   :  { %v21_v9 = vpop.xlane.xlu0 %20 }
  0x94   :  { %v35_v10 = vsub.f32 %v31_v8, %v33_v7  ;;  %v24_v11 = vmul.f32 0.0078125, %v21_v9 }
  0x95   :  { %v30_v12 = vpop.xlane.xlu1 %29 }
  0x96   :  { %v37_v13 = vmax.f32 %v35_v10, 0.0  ;;  %v34_v14 = vmul.f32 %v24_v11, %v24_v11  ;;  %v32_v15 = vmul.f32 0.0078125, %v30_v12  ;;  %v40_v24 = vsub.f32 %v15_v1, %v24_v11 }
  0x98   :  { %v41_v16 = vadd.f32 1e-05, %v37_v13  ;;  %v36_v17 = vsub.f32 %v32_v15, %v34_v14 }
  0x9a   :  { %88 = vrsqrt.f32 %v41_v16  ;;  %v38_v18 = vmax.f32 %v36_v17, 0.0 }
  0x9c   :  { %v42_v19 = vadd.f32 1e-05, %v38_v18 }
  0x9e   :  { %90 = vrsqrt.f32 %v42_v19 }
  0xa4   :  { %v89_v21 = vpop.eup %88 }
  0xa5   :  { %v45_v22 = vmul.f32 %v89_v21, %v39_v20 }
  0xa7   :  { %v53_v26 = vmul.f32 %v77_v23, %v45_v22 }
  0xa8   :  { %v91_v25 = vpop.eup %90 }
  0xa9   :  { %v46_v27 = vmul.f32 %v91_v25, %v40_v24  ;;  %v61_v30 = vadd.f32 %v78_v28, %v53_v26 }
  0xab   :  { %v54_v29 = vmul.f32 %v77_v23, %v46_v27 }
  0xad   :  { %v62_v31 = vadd.f32 %v78_v28, %v54_v29 }
  0xaf   :  { %v86_v32 = vpack.c.bf16 %v62_v31, %v61_v30 }
  0xb1   :  { %87 = vst [vmem:[%s130_s3] sm:$0xff] %v86_v32  }

// kernel: ner_forward.7
= control target key start
LH: loop header
LB: loop body
LE: loop exit
PB: predicated region body
PF: predicated region fallthrough
CT: control target
= control target key end

     0   :  { %s1079_s27 = smov 0   ;;  %s1081_s28 = smov 0   ;;  %s1223_s0 = inlined_call_operand.vmem [shape: bf16[16,128], index: 0, kind: input, shape index: {}]   ;;  %s1224_s1 = inlined_call_operand.vmem [shape: f32[2,1,8], index: 1, kind: input, shape index: {}]   ;;  %s1225_s2 = inlined_call_operand.vmem [shape: bf16[4,128,96], index: 2, kind: input, shape index: {}]   ;;  %s1226_s3 = inlined_call_operand.vmem [shape: f32[4,1,96], index: 3, kind: input, shape index: {}]   ;;  %s1227_s4 = inlined_call_operand.vmem [shape: bf16[4,32,128], index: 4, kind: input, shape index: {}]   ;;  %s1228_s5 = inlined_call_operand.vmem [shape: f32[1,128], index: 5, kind: input, shape index: {}]   ;;  %s1229_s6 = inlined_call_operand.vmem [shape: f32[1,128], index: 6, kind: input, shape index: {}]   ;;  %s1230_s7 = inlined_call_operand.vmem [shape: f32[1,128], index: 7, kind: input, shape index: {}]   ;;  %s1231_s8 = inlined_call_operand.vmem [shape: bf16[16,128], index: 8, kind: output, shape index: {}]  }
   0x1   :  { %s1083_s29 = smov 0   ;;  %s1085_s30 = smov 0  }
   0x2   :  { %s1087_s9 = smov 0  }
   0x3 LB: > { %1233 = sst [smem:[#allocation3_spill]] %s1023_s30  ;;  %s27_s10 = sadd.s32 1, %s1019_s29  ;;  %s1027_s9 = sphi %s1087_s9, %s18_s9   ;;  %s1023_s30 = sphi %s1085_s30, %s1238_s30   ;;  %s1019_s29 = sphi %s1083_s29, %s1240_s29   ;;  %s1015_s28 = sphi %s1081_s28, %s1236_s28   ;;  %s1011_s27 = sphi %s1079_s27, %s1239_s27  }
   0x4   : > { %s30_s11 = sadd.s32 1, %s1023_s30  ;;  %p28_p0 = scmp.ge.s32.totalorder %s27_s10, 4 }
   0x5   : > { %p841_p1 = scmp.ge.s32.totalorder %s1027_s9, 1  ;;  %p309_p2 = scmp.lt.s32.totalorder %s1027_s9, 9 }
   0x6   : > { %s1242_s10 = smov (%p28_p0, %s27_s10), 0  ;;  %s1244_s11 = smov (!%p28_p0, %s30_s11), %s1023_s30 }
   0x7   : > { %1234 = sst [smem:[#allocation4_spill]] %s1242_s10  ;;  %p310_p3 = pnand %p841_p1, %p309_p2 }
   0x8   : > { %p32_p4 = scmp.ge.s32.totalorder %s1244_s11, 2  ;;  %p357_p5 = scmp.lt.s32.totalorder (!%p310_p3), %s1015_s28, 1 }
   0x9   : > { %313 = sbr.rel (%p310_p3) target bundleno = 1539 (0x603), region = 52  ;;  %p364_p6 = scmp.lt.s32.totalorder (!%p310_p3), %s1011_s27, 3 }
   0xa   : > { %s1246_s11 = smov (%p32_p4, %s1244_s11), 0  ;;  %p848_p7 = scmp.ne.s32.totalorder (!%p310_p3), %s1011_s27, 0 }
   0xb   : > { %1235 = sst [smem:[#allocation5_spill]] %s1246_s11 }
  0x10   : > { %s1248_s28 = smov (!%p357_p5, %s1015_s28), 1  ;;  %385 = sbr.rel (%p848_p7) target bundleno = 23 (0x17), region = 56 }
  0x11   : > { %s1115_s12 = scalar_select %p364_p6, %s1011_s27, 3 }
  0x12   : > { %s842_s13 = sshll.u32 %s1248_s28, 2  ;;  %s363_s16 = scalar_lea.vmem %s1224_s1, %s1248_s28  ;;  %v1029_v0 = vmov (!%p848_p7), 0.0  }
  0x13   : > { %s1125_s19 = scalar_lea.vmem %s1223_s0, %s842_s13  ;;  %s870_s20 = sshll.u32 %s1115_s12, 6  ;;  %386 = vst [vmem:[#allocation2] sm:$0xff] (!%p848_p7), %v1029_v0 }
  0x14   : > { %s1131_s23 = scalar_lea.vmem %s1225_s2, %s870_s20  ;;  %s371_s26 = scalar_lea.vmem %s1226_s3, %s1115_s12 }
  0x15   : > { %s871_s11 = sshll.u32 %s1115_s12, 4  ;;  %s1141_s14 = scalar_lea.vmem %s1231_s8, %s842_s13 }
  0x16   : > { %s1146_s18 = scalar_lea.vmem %s1227_s4, %s871_s11 }
  0x17 PF: > { %v973_v1 = vld [vmem:[%s1131_s23] sm:$0xff]   ;;  %v1030_v2 = vmov 0.0   ;;  %v974_v3 = vld [vmem:[%s1131_s23 + $0x8] sm:$0xff]   ;;  %vm1031_vm0 = vmmov 0   ;;  %v975_v4 = vld [vmem:[%s1131_s23 + $0x10] sm:$0xff]   ;;  %s1032_s11 = smov 96  }
  0x18   : > { %888 = vmatprep.subr.bf16.mxu0 %v1030_v2  ;;  %908 = vmatprep.subr.bf16.mxu1 %v1030_v2  ;;  %v976_v5 = vld [vmem:[%s1131_s23 + $0x18] sm:$0xff]   ;;  %v977_v6 = vld [vmem:[%s1131_s23 + $0x20] sm:$0xff]   ;;  %v978_v7 = vld [vmem:[%s1131_s23 + $0x28] sm:$0xff]   ;;  %vm510_vm1 = vcmask 261120   ;;  %vm557_vm2 = vcmask 64512   ;;  %s1033_s28 = smov 64  }
  0x19   : > { %889 = vmatpush3.bf16.msra.mxu0 %v973_v1  ;;  %904 = vmatprep.mubr.msk.bf16.mxu0 %vm1031_vm0, %v1030_v2  ;;  %v979_v8 = vld [vmem:[%s1131_s23 + $0x30] sm:$0xff]   ;;  %v980_v9 = vld [vmem:[%s1131_s23 + $0x38] sm:$0xff]   ;;  %v387_v10 = vld [vmem:[%s1125_s19] sm:$0xf]  ;;  %vm575_vm3 = vcmask 1043456   ;;  %p864_p8 = scmp.ne.s32.totalorder %s1011_s27, 3 }
  0x1a   : > { %890 = vmatprep.subr.bf16.mxu0 %v1030_v2  ;;  %910 = vmatprep.mubr.msk.bf16.mxu1 %vm1031_vm0, %v1030_v2  ;;  %v849_v11 = vld [vmem:[%s371_s26] ss:$0 sm:$0xff]  ;;  %v982_v39 = vld [vmem:[%s1146_s18 + $0x8] sm:$0xff]  }
  0x1b   : > { %v858_v20 = vld [vmem:[%s363_s16] ss:$0 sm:$0xff] }
  0x1c   : > { %v981_v37 = vld [vmem:[%s1146_s18] sm:$0xff]  }
  0x1d   : > { %891 = vmatpush3.bf16.msra.mxu0 %v974_v3  ;;  %v619_v45 = vld [vmem:[#allocation2] sm:$0xff] }
  0x1e   : > { %892 = vmatprep.subr.bf16.mxu0 %v1030_v2  ;;  %v865_v52 = vld [vmem:[%s1228_s5] ss:$0 sm:$0xff] (!%p864_p8) }
  0x1f   : > { %v695_v53 = vld [vmem:[%s1125_s19] sm:$0xf] (!%p864_p8) }
  0x20   : > { %v696_v55 = vunpack.c.l.bf16 (!%p864_p8), %v695_v53 }
  0x21   : > { %893 = vmatpush3.bf16.msra.mxu0 %v975_v4  ;;  %v866_v4 = vld [vmem:[%s1229_s6] ss:$0 sm:$0xff] (!%p864_p8) }
  0x22   : > { %894 = vmatprep.subr.bf16.mxu0 %v1030_v2 }
  0x25   : > { %895 = vmatpush3.bf16.msra.mxu0 %v976_v5 }
  0x26   : > { %896 = vmatprep.subr.bf16.mxu0 %v1030_v2 }
  0x29   : > { %897 = vmatpush3.bf16.msra.mxu0 %v977_v6  ;;  %v867_v6 = vld [vmem:[%s1230_s7] ss:$0 sm:$0xff] (!%p864_p8) }
  0x2a   : > { %898 = vmatprep.subr.bf16.mxu0 %v1030_v2 }
  0x2d   : > { %899 = vmatpush3.bf16.msra.mxu0 %v978_v7 }
  0x2e   : > { %900 = vmatprep.subr.bf16.mxu0 %v1030_v2 }
  0x31   : > { %901 = vmatpush3.bf16.msra.mxu0 %v979_v8 }
  0x32   : > { %902 = vmatprep.subr.bf16.mxu0 %v1030_v2 }
  0x35   : > { %903 = vmatpush3.bf16.msra.mxu0 %v980_v9 }
  0x38   : > { %905 = vmatmul.mubr.bf16.vlgmr.msra.gmra.mrb[0].mxu0 %v387_v10 }
 0x10b   : > { %v493_v12 = vpop.f32.mrb[0].mxu0 }
 0x10c   : > { %v494_v13 = vadd.f32 %v849_v11, %v493_v12  ;;  %v906_v14 = vpop.f32.mrb[1].mxu0 }
 0x10d   : > { %v496_v15 = vpop.f32.mrb[2].mxu0 }
 0x10e   : > { %v499_v16 = vpack.c.bf16 %v494_v13, %v494_v13  ;;  %v907_v17 = vpop.f32.mrb[3].mxu0 }
 0x110   : > { %508 = vrot.lane.b32.xlu0 %v499_v16, %s1032_s11 }
 0x182   : > { %v509_v18 = vpop.permute.xlu0 %508 }
 0x183   : > { %v515_v19 = vsel %vm510_vm1, %v509_v18, 0 }
 0x184   : > { %909 = vmatpush3.bf16.xpose.msra.mxu1 %v515_v19 }
 0x185   : > { %914 = vmatprep.subr.bf16.mxu1 %v1030_v2 }
 0x18b   : > { %911 = vmatmul.mubr.msk.bf16.vlgmr.msra.gmra.mrb[0].mxu1 %vm510_vm1, %v499_v16 }
 0x18c   : > { %916 = vmatprep.mubr.msk.bf16.mxu1 %vm1031_vm0, %v1030_v2 }
 0x25e   : > { %v551_v21 = vpop.f32.mrb[0].mxu1 }
 0x25f   : > { %v552_v22 = vadd.f32 %v858_v20, %v551_v21  ;;  %v912_v23 = vpop.f32.mrb[1].mxu1 }
 0x260   : > { %v554_v24 = vpop.f32.mrb[2].mxu1 }
 0x261   : > { %v913_v25 = vpop.f32.mrb[3].mxu1  ;;  %v558_v26 = vsel %vm557_vm2, %v552_v22, -inf }
 0x262   : > { %559 = vmax.xlane.f32.xlu0 %v558_v26 }
 0x2ef   : > { %v560_v27 = vpop.xlane.xlu0 %559 }
 0x2f0   : > { %v561_v28 = vsub.f32 %v552_v22, %v560_v27 }
 0x2f2   : > { %v562_v29 = vmul.f32 1.442695, %v561_v28 }
 0x2f4   : > { %983 = vpow2.f32 %v562_v29 }
 0x2fe   : > { %v984_v30 = vpop.eup %983 }
 0x2ff   : > { %v564_v31 = vsel %vm557_vm2, %v984_v30, 0.0 }
 0x300   : > { %565 = vadd.xlane.f32.xlu1 %v564_v31 }
 0x311   : > { %570 = vrot.lane.b32.xlu1 %v499_v16, %s1033_s28 }
 0x38d   : > { %v566_v32 = vpop.xlane.xlu1 %565 }
 0x38e   : > { %985 = vrcp.f32 %v566_v32 }
 0x391   : > { %v571_v33 = vpop.permute.xlu1 %570 }
 0x392   : > { %v577_v34 = vsel %vm575_vm3, %v571_v33, 0 }
 0x393   : > { %915 = vmatpush3.bf16.msra.mxu1 %v577_v34 }
 0x394   : > { %920 = vmatprep.subr.bf16.mxu1 %v1030_v2 }
 0x398   : > { %v986_v35 = vpop.eup %985 }
 0x399   : > { %v568_v36 = vmul.f32 %v986_v35, %v984_v30 }
 0x39b   : > { %v569_v38 = vpack.c.bf16 %v568_v36, %v568_v36 }
 0x39d   : > { %917 = vmatmul.mubr.msk.bf16.vlgmr.msra.gmra.mrb[4].mxu1 %vm557_vm2, %v569_v38 }
 0x39e   : > { %921 = vmatpush3.bf16.msra.mxu1 %v981_v37  ;;  %924 = vmatprep.mubr.msk.bf16.mxu1 %vm1031_vm0, %v1030_v2 }
 0x39f   : > { %922 = vmatprep.subr.bf16.mxu1 %v1030_v2 }
 0x3a2   : > { %923 = vmatpush3.bf16.msra.mxu1 %v982_v39 }
 0x470   : > { %v613_v40 = vpop.f32.mrb[4].mxu1 }
 0x471   : > { %v620_v41 = vpack.c.bf16 %v613_v40, %v613_v40  ;;  %v918_v42 = vpop.f32.mrb[5].mxu1 }
 0x472   : > { %v616_v43 = vpop.f32.mrb[6].mxu1 }
 0x473   : > { %v919_v44 = vpop.f32.mrb[7].mxu1  ;;  %925 = vmatmul.mubr.msk.bf16.vlgmr.msra.gmra.mrb[8].mxu1 %vm510_vm1, %v620_v41 }
 0x543   : > { %685 = sbr.rel (%p864_p8) target bundleno = 1539 (0x603), region = 60 }
 0x546   : > { %v674_v46 = vpop.f32.mrb[8].mxu1 }
 0x547   : > { %v680_v47 = vadd.f32 %v674_v46, %v619_v45  ;;  %v926_v48 = vpop.f32.mrb[9].mxu1 }
 0x548   : > { %v677_v49 = vpop.f32.mrb[10].mxu1 }
 0x549   : > { %681 = vst [vmem:[#allocation2] sm:$0xff] %v680_v47  ;;  %v927_v50 = vpop.f32.mrb[11].mxu1 }
 0x550   : > { %v686_v51 = vld [vmem:[#allocation2] sm:$0xff] }
 0x551   : > { %v694_v54 = vadd.f32 %v865_v52, %v686_v51 }
 0x553   : > { %v697_v56 = vadd.f32 %v696_v55, %v694_v54 }
 0x555   : > { %700 = vadd.xlane.f32.xlu0 %v697_v56  ;;  %v704_v57 = vmul.f32 %v697_v56, %v697_v56 }
 0x559   : > { %705 = vadd.xlane.f32.xlu0 %v704_v57 }
 0x5e2   : > { %v701_v58 = vpop.xlane.xlu0 %700 }
 0x5e3   : > { %v703_v59 = vmul.f32 0.0078125, %v701_v58 }
 0x5e5   : > { %v708_v61 = vmul.f32 %v703_v59, %v703_v59  ;;  %v711_v2 = vsub.f32 %v697_v56, %v703_v59 }
 0x5e6   : > { %v706_v60 = vpop.xlane.xlu0 %705 }
 0x5e7   : > { %v707_v62 = vmul.f32 0.0078125, %v706_v60 }
 0x5e9   : > { %v709_v63 = vsub.f32 %v707_v62, %v708_v61 }
 0x5eb   : > { %v710_v0 = vmax.f32 %v709_v63, 0.0 }
 0x5ed   : > { %v712_v1 = vadd.f32 1e-05, %v710_v0 }
 0x5ef   : > { %987 = vrsqrt.f32 %v712_v1 }
 0x5f9   : > { %v988_v3 = vpop.eup %987 }
 0x5fa   : > { %v714_v5 = vmul.f32 %v988_v3, %v711_v2 }
 0x5fc   : > { %v721_v7 = vmul.f32 %v866_v4, %v714_v5 }
 0x5fe   : > { %v728_v8 = vadd.f32 %v867_v6, %v721_v7 }
 0x600   : > { %v729_v9 = vpack.c.bf16 %v728_v8, %v728_v8 }
 0x602   : > { %730 = vst [vmem:[%s1141_s14] sm:$0xf] %v729_v9 }
 0x603 PF: > { %s18_s9 = sadd.s32 1, %s1027_s9   ;;  %s1236_s28 = sld [smem:[#allocation3_spill]] }
 0x604   : > { %p15_p9 = scmp.ge.s32.totalorder %s18_s9, 10   ;;  %s1237_s23 = sld [smem:[#allocation4_spill]] }
 0x605   : > { %s1238_s30 = sld [smem:[#allocation5_spill]]  ;;  %s1239_s27 = smov %s1019_s29 }
 0x606   :  { %17 = sbr.rel (!%p15_p9) target bundleno = 3 (0x3), region = 102 }
 0x60a   : > { %s1240_s29 = smov %s1237_s23 }

// kernel: ner_forward.8
= control target key start
LH: loop header
LB: loop body
LE: loop exit
PB: predicated region body
PF: predicated region fallthrough
CT: control target
= control target key end

     0   :  { %v1045_v1 = vmov 0   ;;  %s1344_s1 = inlined_call_operand.vmem [shape: bf16[128,512], index: 1, kind: input, shape index: {}]   ;;  %s1345_s0 = inlined_call_operand.vmem [shape: bf16[16,128], index: 0, kind: input, shape index: {}]   ;;  %s1346_s3 = inlined_call_operand.vmem [shape: bf16[512,128], index: 3, kind: input, shape index: {}]   ;;  %s1347_s2 = inlined_call_operand.vmem [shape: f32[1,512], index: 2, kind: input, shape index: {}]   ;;  %s1348_s4 = inlined_call_operand.vmem [shape: f32[1,128], index: 4, kind: input, shape index: {}]   ;;  %s1349_s5 = inlined_call_operand.vmem [shape: f32[1,128], index: 5, kind: input, shape index: {}]   ;;  %s1350_s6 = inlined_call_operand.vmem [shape: f32[1,128], index: 6, kind: input, shape index: {}]   ;;  %s1351_s7 = inlined_call_operand.vmem [shape: bf16[16,128], index: 7, kind: output, shape index: {}]  }
   0x1   :  { %v943_v0 = vld [vmem:[%s1344_s1 + $0x4] ss:$16 sps:$4 sm:$0xff]   ;;  %283 = vmatprep.mubr.bf16.mxu0 %v1045_v1  ;;  %326 = vmatprep.mubr.bf16.mxu1 %v1045_v1  ;;  %v945_v2 = vld [vmem:[%s1344_s1 + $0xc] ss:$16 sps:$4 sm:$0xff]   ;;  %v947_v3 = vld [vmem:[%s1344_s1] ss:$16 sps:$4 sm:$0xff]  }
   0x2   :  { %251 = vmatprep.subr.bf16.mxu0 %v943_v0  ;;  %v948_v4 = vld [vmem:[%s1344_s1 + $0x8] ss:$16 sps:$4 sm:$0xff]   ;;  %294 = vmatprep.subr.bf16.mxu1 %v945_v2  ;;  %v949_v5 = vld [vmem:[%s1344_s1 + $0x24] ss:$16 sps:$4 sm:$0xff]   ;;  %v951_v6 = vld [vmem:[%s1344_s1 + $0x2c] ss:$16 sps:$4 sm:$0xff]   ;;  %v65_v2 = vlaneseq }
   0x3   :  { %252 = vmatpush1.bf16.msra.mxu0 %v947_v3  ;;  %295 = vmatpush1.bf16.msra.mxu1 %v948_v4  ;;  %v953_v7 = vld [vmem:[%s1344_s1 + $0x20] ss:$16 sps:$4 sm:$0xff]   ;;  %v954_v8 = vld [vmem:[%s1344_s1 + $0x28] ss:$16 sps:$4 sm:$0xff]   ;;  %v955_v9 = vld [vmem:[%s1344_s1 + $0x44] ss:$16 sps:$4 sm:$0xff]  }
   0x4   :  { %253 = vmatprep.subr.bf16.mxu0 %v949_v5  ;;  %296 = vmatprep.subr.bf16.mxu1 %v951_v6  ;;  %v957_v10 = vld [vmem:[%s1344_s1 + $0x4c] ss:$16 sps:$4 sm:$0xff]   ;;  %v959_v11 = vld [vmem:[%s1344_s1 + $0x40] ss:$16 sps:$4 sm:$0xff]   ;;  %v960_v12 = vld [vmem:[%s1344_s1 + $0x48] ss:$16 sps:$4 sm:$0xff]  }
   0x5   :  { %v961_v13 = vld [vmem:[%s1344_s1 + $0x64] ss:$16 sps:$4 sm:$0xff]   ;;  %v963_v14 = vld [vmem:[%s1344_s1 + $0x6c] ss:$16 sps:$4 sm:$0xff]   ;;  %v965_v15 = vld [vmem:[%s1344_s1 + $0x60] ss:$16 sps:$4 sm:$0xff]  }
   0x6   :  { %v966_v16 = vld [vmem:[%s1344_s1 + $0x68] ss:$16 sps:$4 sm:$0xff]   ;;  %v967_v17 = vld [vmem:[%s1344_s1 + $0x84] ss:$16 sps:$4 sm:$0xff]   ;;  %v969_v18 = vld [vmem:[%s1344_s1 + $0x8c] ss:$16 sps:$4 sm:$0xff]  }
   0x7   :  { %254 = vmatpush1.bf16.msra.mxu0 %v953_v7  ;;  %297 = vmatpush1.bf16.msra.mxu1 %v954_v8  ;;  %v971_v19 = vld [vmem:[%s1344_s1 + $0x80] ss:$16 sps:$4 sm:$0xff]   ;;  %v972_v20 = vld [vmem:[%s1344_s1 + $0x88] ss:$16 sps:$4 sm:$0xff]   ;;  %v973_v21 = vld [vmem:[%s1344_s1 + $0xa4] ss:$16 sps:$4 sm:$0xff]  }
   0x8   :  { %255 = vmatprep.subr.bf16.mxu0 %v955_v9  ;;  %298 = vmatprep.subr.bf16.mxu1 %v957_v10  ;;  %v975_v22 = vld [vmem:[%s1344_s1 + $0xac] ss:$16 sps:$4 sm:$0xff]   ;;  %v977_v23 = vld [vmem:[%s1344_s1 + $0xa0] ss:$16 sps:$4 sm:$0xff]   ;;  %v978_v24 = vld [vmem:[%s1344_s1 + $0xa8] ss:$16 sps:$4 sm:$0xff]  }
   0x9   :  { %v979_v25 = vld [vmem:[%s1344_s1 + $0xc4] ss:$16 sps:$4 sm:$0xff]   ;;  %v981_v26 = vld [vmem:[%s1344_s1 + $0xcc] ss:$16 sps:$4 sm:$0xff]   ;;  %v983_v27 = vld [vmem:[%s1344_s1 + $0xc0] ss:$16 sps:$4 sm:$0xff]  }
   0xa   :  { %v984_v28 = vld [vmem:[%s1344_s1 + $0xc8] ss:$16 sps:$4 sm:$0xff]   ;;  %v985_v29 = vld [vmem:[%s1344_s1 + $0xe4] ss:$16 sps:$4 sm:$0xff]   ;;  %v987_v30 = vld [vmem:[%s1344_s1 + $0xec] ss:$16 sps:$4 sm:$0xff]  }
   0xb   :  { %256 = vmatpush1.bf16.msra.mxu0 %v959_v11  ;;  %299 = vmatpush1.bf16.msra.mxu1 %v960_v12  ;;  %v989_v31 = vld [vmem:[%s1344_s1 + $0xe0] ss:$16 sps:$4 sm:$0xff]   ;;  %v990_v32 = vld [vmem:[%s1344_s1 + $0xe8] ss:$16 sps:$4 sm:$0xff]   ;;  %v66_v3 = vshrl.u32 %v65_v2, 7 }
   0xc   :  { %257 = vmatprep.subr.bf16.mxu0 %v961_v13  ;;  %300 = vmatprep.subr.bf16.mxu1 %v963_v14  ;;  %v1185_v33 = vld [vmem:[%s1345_s0] sm:$0xff]   ;;  %v996_v38 = vld [vmem:[%s1346_s3 + $0x48] sm:$0xff]   ;;  %v1000_v42 = vld [vmem:[%s1346_s3 + $0x50] sm:$0xff]  }
   0xd   :  { %v992_v34 = vld [vmem:[%s1346_s3 + $0x40] sm:$0xff]   ;;  %v997_v39 = vld [vmem:[%s1346_s3 + $0xc8] sm:$0xff]   ;;  %v1001_v43 = vld [vmem:[%s1346_s3 + $0xd0] sm:$0xff]   ;;  %v67_v4 = vsub.s32 0, %v66_v3  ;;  %v75_v5 = vsub.s32 2, %v66_v3  ;;  %v71_v7 = vsub.s32 1, %v66_v3 }
   0xe   :  { %v993_v35 = vld [vmem:[%s1346_s3 + $0xc0] sm:$0xff]   ;;  %v998_v40 = vld [vmem:[%s1346_s3 + $0x8] sm:$0xff]   ;;  %v1002_v44 = vld [vmem:[%s1346_s3 + $0x10] sm:$0xff]   ;;  %v79_v8 = vsub.s32 3, %v66_v3 }
   0xf   :  { %258 = vmatpush1.bf16.msra.mxu0 %v965_v15  ;;  %301 = vmatpush1.bf16.msra.mxu1 %v966_v16  ;;  %v994_v36 = vld [vmem:[%s1346_s3] sm:$0xff]   ;;  %v999_v41 = vld [vmem:[%s1346_s3 + $0x88] sm:$0xff]   ;;  %v1003_v45 = vld [vmem:[%s1346_s3 + $0x90] sm:$0xff]  }
  0x10   :  { %259 = vmatprep.subr.bf16.mxu0 %v967_v17  ;;  %302 = vmatprep.subr.bf16.mxu1 %v969_v18  ;;  %v995_v37 = vld [vmem:[%s1346_s3 + $0x80] sm:$0xff]   ;;  %v1004_v46 = vld [vmem:[%s1346_s3 + $0x58] sm:$0xff]   ;;  %v1012_v54 = vld [vmem:[%s1346_s3 + $0x68] sm:$0xff]  }
  0x11   :  { %v1005_v47 = vld [vmem:[%s1346_s3 + $0xd8] sm:$0xff]   ;;  %v1008_v50 = vld [vmem:[%s1346_s3 + $0x60] sm:$0xff]   ;;  %v1013_v55 = vld [vmem:[%s1346_s3 + $0xe8] sm:$0xff]  }
  0x12   :  { %v1006_v48 = vld [vmem:[%s1346_s3 + $0x18] sm:$0xff]   ;;  %v1009_v51 = vld [vmem:[%s1346_s3 + $0xe0] sm:$0xff]   ;;  %v1014_v56 = vld [vmem:[%s1346_s3 + $0x28] sm:$0xff]  }
  0x13   :  { %260 = vmatpush1.bf16.msra.mxu0 %v971_v19  ;;  %303 = vmatpush1.bf16.msra.mxu1 %v972_v20  ;;  %v1007_v49 = vld [vmem:[%s1346_s3 + $0x98] sm:$0xff]   ;;  %v1010_v52 = vld [vmem:[%s1346_s3 + $0x20] sm:$0xff]   ;;  %v1015_v57 = vld [vmem:[%s1346_s3 + $0xa8] sm:$0xff]  }
  0x14   :  { %261 = vmatprep.subr.bf16.mxu0 %v973_v21  ;;  %304 = vmatprep.subr.bf16.mxu1 %v975_v22  ;;  %v1011_v53 = vld [vmem:[%s1346_s3 + $0xa0] sm:$0xff]   ;;  %v1016_v58 = vld [vmem:[%s1346_s3 + $0x70] sm:$0xff]   ;;  %v1020_v62 = vld [vmem:[%s1346_s3 + $0x78] sm:$0xff]  }
  0x15   :  { %v1017_v59 = vld [vmem:[%s1346_s3 + $0xf0] sm:$0xff]   ;;  %v1021_v63 = vld [vmem:[%s1346_s3 + $0xf8] sm:$0xff]   ;;  %v63_v6 = vld [vmem:[%s1347_s2] sm:$0xf] }
  0x16   :  { %v1018_v60 = vld [vmem:[%s1346_s3 + $0x30] sm:$0xff]   ;;  %v1022_v0 = vld [vmem:[%s1346_s3 + $0x38] sm:$0xff]   ;;  %v68_v9 = vrot.slane %v63_v6, %v67_v4  ;;  %v76_v10 = vrot.slane %v63_v6, %v75_v5  ;;  %v72_v11 = vrot.slane %v63_v6, %v71_v7  ;;  %v80_v12 = vrot.slane %v63_v6, %v79_v8 }
  0x17   :  { %262 = vmatpush1.bf16.msra.mxu0 %v977_v23  ;;  %305 = vmatpush1.bf16.msra.mxu1 %v978_v24  ;;  %v1019_v61 = vld [vmem:[%s1346_s3 + $0xb0] sm:$0xff]   ;;  %v1023_v1 = vld [vmem:[%s1346_s3 + $0xb8] sm:$0xff]  }
  0x18   :  { %263 = vmatprep.subr.bf16.mxu0 %v979_v25  ;;  %306 = vmatprep.subr.bf16.mxu1 %v981_v26 }
  0x1b   :  { %264 = vmatpush1.bf16.msra.mxu0 %v983_v27  ;;  %307 = vmatpush1.bf16.msra.mxu1 %v984_v28 }
  0x1c   :  { %265 = vmatprep.subr.bf16.mxu0 %v985_v29  ;;  %308 = vmatprep.subr.bf16.mxu1 %v987_v30 }
  0x1f   :  { %266 = vmatpush1.bf16.msra.mxu0 %v989_v31  ;;  %309 = vmatpush1.bf16.msra.mxu1 %v990_v32 }
  0x20   :  { %898 = vmatprep.subr.bf16.mxu0 %v992_v34  ;;  %920 = vmatprep.subr.bf16.mxu1 %v993_v35 }
  0x22   :  { %284 = vmatmul.mubr.bf16.vlgmr.msra.gmra.mrb[0].mxu0 %v1185_v33  ;;  %327 = vmatmul.mubr.bf16.vlgmr.msra.gmra.mrb[0].mxu1 %v1185_v33 }
  0x23   :  { %899 = vmatpush3.bf16.msra.mxu0 %v994_v36  ;;  %921 = vmatpush3.bf16.msra.mxu1 %v995_v37 }
  0x24   :  { %900 = vmatprep.subr.bf16.mxu0 %v996_v38  ;;  %922 = vmatprep.subr.bf16.mxu1 %v997_v39 }
  0x27   :  { %901 = vmatpush3.bf16.msra.mxu0 %v998_v40  ;;  %923 = vmatpush3.bf16.msra.mxu1 %v999_v41 }
  0x28   :  { %902 = vmatprep.subr.bf16.mxu0 %v1000_v42  ;;  %924 = vmatprep.subr.bf16.mxu1 %v1001_v43 }
  0x2b   :  { %903 = vmatpush3.bf16.msra.mxu0 %v1002_v44  ;;  %925 = vmatpush3.bf16.msra.mxu1 %v1003_v45 }
  0x2c   :  { %904 = vmatprep.subr.bf16.mxu0 %v1004_v46  ;;  %926 = vmatprep.subr.bf16.mxu1 %v1005_v47 }
  0x2f   :  { %905 = vmatpush3.bf16.msra.mxu0 %v1006_v48  ;;  %927 = vmatpush3.bf16.msra.mxu1 %v1007_v49 }
  0x30   :  { %906 = vmatprep.subr.bf16.mxu0 %v1008_v50  ;;  %928 = vmatprep.subr.bf16.mxu1 %v1009_v51 }
  0x33   :  { %907 = vmatpush3.bf16.msra.mxu0 %v1010_v52  ;;  %929 = vmatpush3.bf16.msra.mxu1 %v1011_v53 }
  0x34   :  { %908 = vmatprep.subr.bf16.mxu0 %v1012_v54  ;;  %930 = vmatprep.subr.bf16.mxu1 %v1013_v55 }
  0x37   :  { %909 = vmatpush3.bf16.msra.mxu0 %v1014_v56  ;;  %931 = vmatpush3.bf16.msra.mxu1 %v1015_v57 }
  0x38   :  { %910 = vmatprep.subr.bf16.mxu0 %v1016_v58  ;;  %932 = vmatprep.subr.bf16.mxu1 %v1017_v59 }
  0x3b   :  { %911 = vmatpush3.bf16.msra.mxu0 %v1018_v60  ;;  %933 = vmatpush3.bf16.msra.mxu1 %v1019_v61 }
  0x3c   :  { %912 = vmatprep.subr.bf16.mxu0 %v1020_v62  ;;  %934 = vmatprep.subr.bf16.mxu1 %v1021_v63 }
  0x3f   :  { %913 = vmatpush3.bf16.msra.mxu0 %v1022_v0  ;;  %935 = vmatpush3.bf16.msra.mxu1 %v1023_v1 }
  0xf5   :  { %v285_v13 = vpop.f32.mrb[0].mxu0  ;;  %v328_v14 = vpop.f32.mrb[0].mxu1 }
  0xf6   :  { %v1288_v15 = vadd.f32 %v285_v13, %v68_v9  ;;  %v1290_v16 = vadd.f32 %v328_v14, %v76_v10  ;;  %v287_v17 = vpop.f32.mrb[1].mxu0  ;;  %v330_v18 = vpop.f32.mrb[1].mxu1 }
  0xf7   :  { %v1292_v19 = vadd.f32 %v287_v17, %v72_v11  ;;  %v1294_v20 = vadd.f32 %v330_v18, %v80_v12  ;;  %v289_v21 = vpop.f32.mrb[2].mxu0  ;;  %v332_v22 = vpop.f32.mrb[2].mxu1 }
  0xf8   :  { %v345_v23 = vmul.f32 0.044715, %v1288_v15  ;;  %v347_v24 = vmul.f32 0.044715, %v1290_v16  ;;  %v290_v25 = vadd.f32 %v289_v21, %v68_v9  ;;  %v333_v26 = vadd.f32 %v332_v22, %v76_v10  ;;  %v291_v27 = vpop.f32.mrb[3].mxu0  ;;  %v334_v28 = vpop.f32.mrb[3].mxu1 }
  0xf9   :  { %v346_v29 = vmul.f32 0.044715, %v1292_v19  ;;  %v348_v30 = vmul.f32 0.044715, %v1294_v20  ;;  %v1300_v31 = vadd.f32 %v291_v27, %v72_v11  ;;  %v1302_v32 = vadd.f32 %v334_v28, %v80_v12 }
  0xfa   :  { %v353_v34 = vmul.f32 %v345_v23, %v1288_v15  ;;  %v355_v35 = vmul.f32 %v347_v24, %v1290_v16  ;;  %v349_v36 = vmul.f32 0.044715, %v290_v25  ;;  %v351_v37 = vmul.f32 0.044715, %v333_v26 }
  0xfb   :  { %v354_v38 = vmul.f32 %v346_v29, %v1292_v19  ;;  %v356_v39 = vmul.f32 %v348_v30, %v1294_v20  ;;  %v350_v40 = vmul.f32 0.044715, %v1300_v31  ;;  %v352_v41 = vmul.f32 0.044715, %v1302_v32 }
  0xfc   :  { %v361_v42 = vmul.f32 %v353_v34, %v1288_v15  ;;  %v363_v43 = vmul.f32 %v355_v35, %v1290_v16  ;;  %v357_v44 = vmul.f32 %v349_v36, %v290_v25  ;;  %v359_v45 = vmul.f32 %v351_v37, %v333_v26 }
  0xfd   :  { %v362_v46 = vmul.f32 %v354_v38, %v1292_v19  ;;  %v364_v47 = vmul.f32 %v356_v39, %v1294_v20  ;;  %v358_v48 = vmul.f32 %v350_v40, %v1300_v31  ;;  %v360_v49 = vmul.f32 %v352_v41, %v1302_v32 }
  0xfe   :  { %v369_v50 = vadd.f32 %v361_v42, %v1288_v15  ;;  %v371_v51 = vadd.f32 %v363_v43, %v1290_v16  ;;  %v365_v52 = vmul.f32 %v357_v44, %v290_v25  ;;  %v367_v53 = vmul.f32 %v359_v45, %v333_v26 }
  0xff   :  { %v366_v54 = vmul.f32 %v358_v48, %v1300_v31  ;;  %v368_v55 = vmul.f32 %v360_v49, %v1302_v32  ;;  %v370_v60 = vadd.f32 %v362_v46, %v1292_v19  ;;  %v372_v0 = vadd.f32 %v364_v47, %v1294_v20 }
 0x100   :  { %v377_v56 = vmul.f32 0.7978846, %v369_v50  ;;  %v379_v57 = vmul.f32 0.7978846, %v371_v51  ;;  %v373_v58 = vadd.f32 %v365_v52, %v290_v25  ;;  %v375_v59 = vadd.f32 %v367_v53, %v333_v26 }
 0x101   :  { %v374_v61 = vadd.f32 %v366_v54, %v1300_v31  ;;  %v378_v1 = vmul.f32 0.7978846, %v370_v60  ;;  %v376_v3 = vadd.f32 %v368_v55, %v1302_v32  ;;  %v380_v4 = vmul.f32 0.7978846, %v372_v0 }
 0x102   :  { %1025 = vtanh.f32 %v377_v56  ;;  %v381_v62 = vmul.f32 0.7978846, %v373_v58  ;;  %v383_v63 = vmul.f32 0.7978846, %v375_v59  ;;  %v337_v12 = vmul.f32 0.5, %v1288_v15 }
 0x103   :  { %1027 = vtanh.f32 %v379_v57  ;;  %v382_v2 = vmul.f32 0.7978846, %v374_v61  ;;  %v384_v5 = vmul.f32 0.7978846, %v376_v3  ;;  %v341_v13 = vmul.f32 0.5, %v290_v25 }
 0x104   :  { %1029 = vtanh.f32 %v381_v62  ;;  %v339_v18 = vmul.f32 0.5, %v1290_v16  ;;  %v343_v21 = vmul.f32 0.5, %v333_v26  ;;  %v338_v24 = vmul.f32 0.5, %v1292_v19 }
 0x105   :  { %1031 = vtanh.f32 %v383_v63  ;;  %v342_v34 = vmul.f32 0.5, %v1300_v31  ;;  %v340_v25 = vmul.f32 0.5, %v1294_v20  ;;  %v344_v38 = vmul.f32 0.5, %v1302_v32  ;;  %v854_v20 = vld [vmem:[%s1348_s4] ss:$0 sm:$0xff] }
 0x106   :  { %1033 = vtanh.f32 %v378_v1  ;;  %v29_v55 = vunpack.c.l.bf16 %v1185_v33  ;;  %v30_v60 = vunpack.c.h.bf16 %v1185_v33 }
 0x107   :  { %1035 = vtanh.f32 %v382_v2 }
 0x108   :  { %1037 = vtanh.f32 %v380_v4 }
 0x109   :  { %1039 = vtanh.f32 %v384_v5 }
 0x10c   :  { %v1026_v6 = vpop.eup %1025 }
 0x10d   :  { %v1028_v7 = vpop.eup %1027  ;;  %v393_v8 = vadd.f32 1.0, %v1026_v6 }
 0x10e   :  { %v1030_v9 = vpop.eup %1029  ;;  %v395_v10 = vadd.f32 1.0, %v1028_v7 }
 0x10f   :  { %v1032_v11 = vpop.eup %1031  ;;  %v397_v14 = vadd.f32 1.0, %v1030_v9  ;;  %v401_v28 = vmul.f32 %v393_v8, %v337_v12 }
 0x110   :  { %v1034_v17 = vpop.eup %1033  ;;  %v399_v22 = vadd.f32 1.0, %v1032_v11  ;;  %v403_v36 = vmul.f32 %v395_v10, %v339_v18 }
 0x111   :  { %v1036_v23 = vpop.eup %1035  ;;  %v394_v27 = vadd.f32 1.0, %v1034_v17  ;;  %v405_v29 = vmul.f32 %v397_v14, %v341_v13 }
 0x112   :  { %v1038_v30 = vpop.eup %1037  ;;  %v398_v35 = vadd.f32 1.0, %v1036_v23  ;;  %v407_v37 = vmul.f32 %v399_v22, %v343_v21 }
 0x113   :  { %v1040_v15 = vpop.eup %1039  ;;  %v396_v16 = vadd.f32 1.0, %v1038_v30  ;;  %v409_v26 = vpack.c.bf16 %v405_v29, %v401_v28  ;;  %v402_v39 = vmul.f32 %v394_v27, %v338_v24  ;;  %v887_v24 = vld [vmem:[%s1349_s5] ss:$0 sm:$0xff] }
 0x114   :  { %v406_v40 = vmul.f32 %v398_v35, %v342_v34  ;;  %v400_v41 = vadd.f32 1.0, %v1040_v15  ;;  %v411_v19 = vpack.c.bf16 %v407_v37, %v403_v36  ;;  %v888_v34 = vld [vmem:[%s1350_s6] ss:$0 sm:$0xff] }
 0x115   :  { %v404_v43 = vmul.f32 %v396_v16, %v340_v25 }
 0x116   :  { %v410_v42 = vpack.c.bf16 %v406_v40, %v402_v39  ;;  %v408_v44 = vmul.f32 %v400_v41, %v344_v38 }
 0x118   :  { %708 = vmatprep.mubr.bf16.mxu0 %v410_v42  ;;  %v412_v45 = vpack.c.bf16 %v408_v44, %v404_v43 }
 0x119   :  { %709 = vmatmul.mubr.bf16.vlgmr.msra.gmra.mrb[4].mxu0 %v409_v26 }
 0x11a   :  { %749 = vmatprep.mubr.bf16.mxu1 %v412_v45 }
 0x11b   :  { %750 = vmatmul.mubr.bf16.vlgmr.msra.gmra.mrb[4].mxu1 %v411_v19 }
 0x1ec   :  { %v914_v31 = vpop.f32.mrb[4].mxu0 }
 0x1ed   :  { %v915_v32 = vpop.f32.mrb[5].mxu0 }
 0x1ee   :  { %v936_v46 = vpop.f32.mrb[4].mxu1  ;;  %v916_v47 = vadd.f32 %v915_v32, %v914_v31  ;;  %v917_v48 = vpop.f32.mrb[6].mxu0 }
 0x1ef   :  { %v937_v49 = vpop.f32.mrb[5].mxu1  ;;  %v918_v50 = vpop.f32.mrb[7].mxu0 }
 0x1f0   :  { %v711_v51 = vadd.f32 %v916_v47, %v854_v20  ;;  %v938_v52 = vadd.f32 %v937_v49, %v936_v46  ;;  %v939_v53 = vpop.f32.mrb[6].mxu1  ;;  %v919_v54 = vadd.f32 %v918_v50, %v917_v48 }
 0x1f1   :  { %v940_v56 = vpop.f32.mrb[7].mxu1 }
 0x1f2   :  { %v752_v57 = vadd.f32 %v938_v52, %v711_v51  ;;  %v714_v58 = vadd.f32 %v919_v54, %v854_v20  ;;  %v941_v59 = vadd.f32 %v940_v56, %v939_v53 }
 0x1f4   :  { %v755_v61 = vadd.f32 %v941_v59, %v714_v58  ;;  %v758_v62 = vadd.f32 %v752_v57, %v29_v55 }
 0x1f6   :  { %762 = vadd.xlane.f32.xlu0 %v758_v62  ;;  %v769_v63 = vmul.f32 %v758_v62, %v758_v62  ;;  %v759_v0 = vadd.f32 %v755_v61, %v30_v60 }
 0x1f8   :  { %771 = vadd.xlane.f32.xlu1 %v769_v63  ;;  %v770_v1 = vmul.f32 %v759_v0, %v759_v0 }
 0x1fa   :  { %764 = vadd.xlane.f32.xlu0 %v759_v0 }
 0x1fc   :  { %773 = vadd.xlane.f32.xlu1 %v770_v1 }
 0x283   :  { %v763_v2 = vpop.xlane.xlu0 %762 }
 0x284   :  { %v767_v3 = vmul.f32 0.0078125, %v763_v2 }
 0x285   :  { %v772_v4 = vpop.xlane.xlu1 %771 }
 0x286   :  { %v777_v5 = vmul.f32 %v767_v3, %v767_v3  ;;  %v775_v6 = vmul.f32 0.0078125, %v772_v4  ;;  %v783_v21 = vsub.f32 %v758_v62, %v767_v3 }
 0x287   :  { %v765_v7 = vpop.xlane.xlu0 %764 }
 0x288   :  { %v779_v8 = vsub.f32 %v775_v6, %v777_v5  ;;  %v768_v9 = vmul.f32 0.0078125, %v765_v7 }
 0x289   :  { %v774_v10 = vpop.xlane.xlu1 %773 }
 0x28a   :  { %v781_v11 = vmax.f32 %v779_v8, 0.0  ;;  %v778_v33 = vmul.f32 %v768_v9, %v768_v9  ;;  %v776_v12 = vmul.f32 0.0078125, %v774_v10  ;;  %v784_v27 = vsub.f32 %v759_v0, %v768_v9 }
 0x28c   :  { %v785_v13 = vadd.f32 1e-05, %v781_v11  ;;  %v780_v14 = vsub.f32 %v776_v12, %v778_v33 }
 0x28e   :  { %1041 = vrsqrt.f32 %v785_v13  ;;  %v782_v17 = vmax.f32 %v780_v14, 0.0 }
 0x290   :  { %v786_v18 = vadd.f32 1e-05, %v782_v17 }
 0x292   :  { %1043 = vrsqrt.f32 %v786_v18 }
 0x298   :  { %v1042_v22 = vpop.eup %1041 }
 0x299   :  { %v789_v23 = vmul.f32 %v1042_v22, %v783_v21 }
 0x29b   :  { %v797_v29 = vmul.f32 %v887_v24, %v789_v23 }
 0x29c   :  { %v1044_v28 = vpop.eup %1043 }
 0x29d   :  { %v790_v30 = vmul.f32 %v1044_v28, %v784_v27  ;;  %v805_v36 = vadd.f32 %v888_v34, %v797_v29 }
 0x29f   :  { %v798_v35 = vmul.f32 %v887_v24, %v790_v30 }
 0x2a1   :  { %v806_v37 = vadd.f32 %v888_v34, %v798_v35 }
 0x2a3   :  { %v896_v15 = vpack.c.bf16 %v806_v37, %v805_v36 }
 0x2a5   :  { %897 = vst [vmem:[%s1351_s7] sm:$0xff] %v896_v15  }

// kernel: ner_forward.11
= control target key start
LH: loop header
LB: loop body
LE: loop exit
PB: predicated region body
PF: predicated region fallthrough
CT: control target
= control target key end

     0   :  { %v191_v0 = vmov 0.0   ;;  %vm192_vm0 = vmmov 0   ;;  %s249_s1 = inlined_call_operand.vmem [shape: bf16[128,128], index: 1, kind: input, shape index: {}]   ;;  %s250_s0 = inlined_call_operand.vmem [shape: bf16[16,128], index: 0, kind: input, shape index: {}]   ;;  %s251_s2 = inlined_call_operand.vmem [shape: f32[1,128], index: 2, kind: input, shape index: {}]   ;;  %s252_s3 = inlined_call_operand.vmem [shape: f32[16,128], index: 3, kind: output, shape index: {}]  }
   0x1   :  { %160 = vmatprep.subr.bf16.mxu0 %v191_v0  ;;  %v182_v1 = vld [vmem:[%s249_s1] sm:$0xff]   ;;  %176 = vmatprep.mubr.msk.bf16.mxu0 %vm192_vm0, %v191_v0  ;;  %v183_v2 = vld [vmem:[%s249_s1 + $0x8] sm:$0xff]   ;;  %v184_v3 = vld [vmem:[%s249_s1 + $0x10] sm:$0xff]  }
   0x2   :  { %161 = vmatpush3.bf16.msra.mxu0 %v182_v1  ;;  %v185_v4 = vld [vmem:[%s249_s1 + $0x18] sm:$0xff]   ;;  %v186_v5 = vld [vmem:[%s249_s1 + $0x20] sm:$0xff]   ;;  %v187_v6 = vld [vmem:[%s249_s1 + $0x28] sm:$0xff]  }
   0x3   :  { %162 = vmatprep.subr.bf16.mxu0 %v191_v0  ;;  %v188_v7 = vld [vmem:[%s249_s1 + $0x30] sm:$0xff]   ;;  %v189_v8 = vld [vmem:[%s249_s1 + $0x38] sm:$0xff]   ;;  %v190_v9 = vld [vmem:[%s250_s0] sm:$0xff]  }
   0x4   :  { %v141_v10 = vld [vmem:[%s251_s2] ss:$0 sm:$0xff] }
   0x6   :  { %163 = vmatpush3.bf16.msra.mxu0 %v183_v2 }
   0x7   :  { %164 = vmatprep.subr.bf16.mxu0 %v191_v0 }
   0xa   :  { %165 = vmatpush3.bf16.msra.mxu0 %v184_v3 }
   0xb   :  { %166 = vmatprep.subr.bf16.mxu0 %v191_v0 }
   0xe   :  { %167 = vmatpush3.bf16.msra.mxu0 %v185_v4 }
   0xf   :  { %168 = vmatprep.subr.bf16.mxu0 %v191_v0 }
  0x12   :  { %169 = vmatpush3.bf16.msra.mxu0 %v186_v5 }
  0x13   :  { %170 = vmatprep.subr.bf16.mxu0 %v191_v0 }
  0x16   :  { %171 = vmatpush3.bf16.msra.mxu0 %v187_v6 }
  0x17   :  { %172 = vmatprep.subr.bf16.mxu0 %v191_v0 }
  0x1a   :  { %173 = vmatpush3.bf16.msra.mxu0 %v188_v7 }
  0x1b   :  { %174 = vmatprep.subr.bf16.mxu0 %v191_v0 }
  0x1e   :  { %175 = vmatpush3.bf16.msra.mxu0 %v189_v8 }
  0x21   :  { %177 = vmatmul.mubr.bf16.vlgmr.msra.gmra.mrb[0].mxu0 %v190_v9 }
  0xf4   :  { %v128_v11 = vpop.f32.mrb[0].mxu0 }
  0xf5   :  { %v129_v12 = vadd.f32 %v141_v10, %v128_v11  ;;  %v178_v13 = vpop.f32.mrb[1].mxu0 }
  0xf6   :  { %v131_v14 = vpop.f32.mrb[2].mxu0 }
  0xf7   :  { %135 = vst [vmem:[%s252_s3] sm:$0xff] %v129_v12  ;;  %v132_v15 = vadd.f32 %v141_v10, %v131_v14  ;;  %v179_v16 = vpop.f32.mrb[3].mxu0 }
  0xf9   :  { %136 = vst [vmem:[%s252_s3 + $0x8] sm:$0xff] %v132_v15 }

</bundles_post_ra>
